<compile_context>
chip_gen: v7x
topology: tpu7x:2x2x1
jax: 0.10.0
libtpu: 0.0.40
codegen_flags: <defaults>
</compile_context>

<pallas_src>
import functools

import jax
import jax.numpy as jnp
from jax.experimental import pallas as pl
from jax.experimental.pallas import tpu as pltpu

LN_EPS = 1e-5                      # torch.nn.LayerNorm default
DEFAULT_COMPUTE_DTYPE = jnp.bfloat16   # MXU operand dtype; accum / LN stay f32


# ----------------------------------------------------------------------------
# Generation-aware VMEM budgets
# ----------------------------------------------------------------------------
def _tpu_vmem_capacity_bytes(default=64 << 20):
    try:
        info = pltpu.get_tpu_info()
        for attr in ("vmem_capacity_bytes", "vmem_size_bytes", "vmem_bytes"):
            v = getattr(info, attr, None)
            if v:
                return int(v)
    except Exception:
        pass
    return default


_VMEM_PHYS = _tpu_vmem_capacity_bytes()
if _VMEM_PHYS >= (100 << 20):          # v5e / v6e: 128 MiB VMEM
    _VMEM_LIMIT_CAP = 96 << 20
    _FUSED_PARAM_BUDGET = 40 << 20     # conservative (covers a 2x-buffer fallback)
else:                                  # v7x: 64 MiB VMEM per TensorCore
    _VMEM_LIMIT_CAP = 48 << 20
    _FUSED_PARAM_BUDGET = 20 << 20


# ----------------------------------------------------------------------------
# helpers
# ----------------------------------------------------------------------------
def _round_up(x, m):
    return ((x + m - 1) // m) * m


def _pick_tile_b(B, max_rows=512):
    """Multiple-of-8 divisor of B, preferring >=4 grid steps, then >=2."""
    if B <= 8:
        return B
    for min_steps in (4, 2, 1):
        limit = min(max_rows, B // min_steps)
        limit -= limit % 8
        for t in range(limit, 0, -8):
            if B % t == 0:
                return t
    return B


def _pick_tile_k(K, cap=512):
    """Reduction (Din) tile: multiple of 128 dividing K, or the whole K."""
    if K <= cap:
        return K
    for t in (512, 256, 128):
        if K % t == 0:
            return t
    return K


def _pick_tile_n(N, cap=512):
    """Output-width tile: multiple of 128 dividing N, or the whole N."""
    if N <= cap:
        return N
    for t in (512, 256, 128):
        if t <= cap and N % t == 0:
            return t
    return N


def _pick_tile_b_vmem(Bp, per_row_bytes, fixed_bytes, budget):
    """Largest multiple-of-8 divisor of Bp whose per-step VMEM fits budget."""
    max_rows = max((budget - fixed_bytes) // max(per_row_bytes, 1), 8)
    limit = min(Bp, max_rows)
    limit -= limit % 8
    for t in range(limit, 0, -8):
        if Bp % t == 0:
            return t
    return Bp


def _param_spec(shape, single_buffer):
    """Grid-invariant (VMEM-resident) parameter BlockSpec.

    With single_buffer=True the block is not double-buffered (it never changes
    across grid steps), halving its VMEM footprint.
    """
    index_map = lambda i: (0,) * len(shape)
    if single_buffer:
        try:
            return pl.BlockSpec(shape, index_map, pipeline_mode=pl.Buffered(1))
        except Exception:
            pass
    return pl.BlockSpec(shape, index_map)


# ----------------------------------------------------------------------------
# Fully-fused MLP kernel (all layers in one pallas_call)
# ----------------------------------------------------------------------------
def _fused_mlp_kernel(*refs, meta, compute_dtype):
    # refs = (x_ref, <per-layer params...>, o_ref)
    o_ref = refs[-1]
    params = refs[1:-1]
    h = refs[0][...]                                    # (TB, Din0), compute dtype
    p = 0
    n_layers = len(meta)
    for li, (use_bias, use_ln, use_relu) in enumerate(meta):
        w = params[p][...]; p += 1                      # (Din, Dout), compute dtype
        y = jnp.dot(h, w, preferred_element_type=jnp.float32)   # MXU, f32 acc
        if use_bias:
            y = y + params[p][...].astype(jnp.float32); p += 1
        if use_ln:
            g = params[p][...].astype(jnp.float32); p += 1
            bt = params[p][...].astype(jnp.float32); p += 1
            mean = jnp.mean(y, axis=-1, keepdims=True)        # stable two-pass LN
            yc = y - mean
            var = jnp.mean(yc * yc, axis=-1, keepdims=True)
            y = yc * jax.lax.rsqrt(var + LN_EPS)
            y = y * g + bt
        if use_relu:
            y = jnp.maximum(y, 0.0)
        if li + 1 < n_layers:
            h = y.astype(compute_dtype)                 # next matmul in compute dtype
        else:
            o_ref[...] = y.astype(o_ref.dtype)          # single lane-dense store


def prepare_mlp(layers, compute_dtype=DEFAULT_COMPUTE_DTYPE):
    """One-time parameter preparation: cast to compute dtype, pad the last
    layer to a 128-lane multiple, materialize the operand list.  Done once and
    cached so no per-forward HBM read/write of weights for cast/pad ops."""
    cdtype = jnp.dtype(compute_dtype)
    n_layers = len(layers)
    last = layers[-1]
    dout_final = last["w"].shape[1]
    # zero-padding is exact only without LayerNorm on the last layer
    dout_pad = _round_up(dout_final, 128) if not last["use_layer_norm"] else dout_final

    operands, shapes, meta = [], [], []
    param_bytes = 0
    widths = [layers[0]["w"].shape[0]]
    for li, lyr in enumerate(layers):
        w = lyr["w"].astype(cdtype)
        dout = w.shape[1]
        pad = dout_pad - dout if li == n_layers - 1 else 0
        if pad:
            w = jnp.pad(w, ((0, 0), (0, pad)))
        operands.append(w); shapes.append(w.shape)
        param_bytes += w.size * w.dtype.itemsize
        widths.append(w.shape[1])

        use_bias = lyr.get("use_bias", True)
        if use_bias:
            b = lyr["b"].astype(jnp.float32).reshape(1, -1)
            if pad:
                b = jnp.pad(b, ((0, 0), (0, pad)))
            operands.append(b); shapes.append(b.shape)
            param_bytes += b.size * 4
        if lyr["use_layer_norm"]:
            g = lyr["gamma"].astype(jnp.float32).reshape(1, -1)
            bt = lyr["beta"].astype(jnp.float32).reshape(1, -1)
            operands += [g, bt]; shapes += [g.shape, bt.shape]
            param_bytes += (g.size + bt.size) * 4
        meta.append((use_bias, bool(lyr["use_layer_norm"]), bool(lyr["use_relu"])))

    operands = [jax.block_until_ready(op) for op in operands]   # materialize once
    return dict(
        operands=tuple(operands), shapes=tuple(shapes), meta=tuple(meta),
        din0=layers[0]["w"].shape[0], dout_final=dout_final, dout_pad=dout_pad,
        max_width=max(widths), param_bytes=param_bytes, compute_dtype=cdtype)


def mlp_forward_fused(prepared, x, *, interpret=False):
    """x: (B, Din0).  All layer params are VMEM-resident for the whole grid."""
    B, din0 = x.shape
    assert din0 == prepared["din0"], "input feature dim mismatch"
    out_dtype = x.dtype
    cdtype = prepared["compute_dtype"]
    dout_pad = prepared["dout_pad"]

    xc = x.astype(cdtype)
    Bp = _round_up(B, 8) if B > 8 else B       # pad batch instead of one huge block
    if Bp != B:
        xc = jnp.pad(xc, ((0, Bp - B), (0, 0)))
    tile_b = _pick_tile_b(Bp)

    kernel = functools.partial(_fused_mlp_kernel, meta=prepared["meta"],
                               compute_dtype=cdtype)

    itemsize = cdtype.itemsize
    act_bytes = (2 * tile_b * (din0 + dout_pad) * max(itemsize, 4)
                 + 2 * tile_b * prepared["max_width"] * 4)   # f32 intermediates
    vmem_est = prepared["param_bytes"] + act_bytes + (4 << 20)
    vmem_limit = int(min(max(2 * vmem_est, 16 << 20), _VMEM_LIMIT_CAP))

    def run(single_buffer):
        in_specs = [pl.BlockSpec((tile_b, din0), lambda i: (i, 0))]
        in_specs += [_param_spec(shp, single_buffer) for shp in prepared["shapes"]]
        return pl.pallas_call(
            kernel,
            out_shape=jax.ShapeDtypeStruct((Bp, dout_pad), out_dtype),
            grid=(Bp // tile_b,),
            in_specs=in_specs,
            out_specs=pl.BlockSpec((tile_b, dout_pad), lambda i: (i, 0)),
            compiler_params=pltpu.CompilerParams(
                dimension_semantics=("parallel",),
                vmem_limit_bytes=vmem_limit),
            interpret=interpret,
        )(xc, *prepared["operands"])

    try:
        out = run(True)             # single-buffered grid-invariant params
    except Exception:
        out = run(False)            # older JAX: plain (double-buffered) specs

    if Bp != B:
        out = out[:B]
    if dout_pad != prepared["dout_final"]:
        out = out[:, :prepared["dout_final"]]
    return out


# ----------------------------------------------------------------------------
# Fallback: single-layer kernel with B/N/K tiling + f32 accumulator
# (used when the layer weights are too big to keep resident in VMEM)
# ----------------------------------------------------------------------------
def _tiled_linear_kernel(*refs, use_bias, use_layer_norm, use_relu):
    acc_ref = refs[-1]       # VMEM scratch, f32
    o_ref = refs[-2]
    x_ref, w_ref = refs[0], refs[1]
    b_ref = g_ref = bt_ref = None
    idx = 2
    if use_bias:
        b_ref = refs[idx]; idx += 1
    if use_layer_norm:
        g_ref, bt_ref = refs[idx], refs[idx + 1]

    k = pl.program_id(2)

    @pl.when(k == 0)
    def _():
        acc_ref[...] = jnp.zeros_like(acc_ref)

    acc_ref[...] += jnp.dot(x_ref[...], w_ref[...],
                            preferred_element_type=jnp.float32)

    @pl.when(k == pl.num_programs(2) - 1)
    def _():
        y = acc_ref[...]
        if use_bias:
            y = y + b_ref[...].astype(jnp.float32)
        if use_layer_norm:
            mean = jnp.mean(y, axis=-1, keepdims=True)
            yc = y - mean
            var = jnp.mean(yc * yc, axis=-1, keepdims=True)
            y = yc * jax.lax.rsqrt(var + LN_EPS)
            y = y * g_ref[...].astype(jnp.float32) + bt_ref[...].astype(jnp.float32)
        if use_relu:
            y = jnp.maximum(y, 0.0)
        o_ref[...] = y.astype(o_ref.dtype)


def fused_linear_tiled(x, w, b=None, gamma=None, beta=None, *,
                       use_layer_norm=False, use_relu=False,
                       compute_dtype=DEFAULT_COMPUTE_DTYPE,
                       max_tile_n=None, interpret=False):
    """One Linear(+LayerNorm)(+ReLU) layer with batch + output + reduction tiling."""
    # TODO(synk): for repeated calls with the same big layer, hoist the weight
    # cast/pad below into a prepare step like prepare_mlp (done for the fused path).
    B, K = x.shape
    dout = w.shape[1]
    out_dtype = x.dtype
    cdtype = jnp.dtype(compute_dtype)
    use_bias = b is not None

    dout_pad = dout if use_layer_norm else _round_up(dout, 128)
    wc = w.astype(cdtype)
    bf = b.astype(jnp.float32).reshape(1, -1) if use_bias else None
    if dout_pad != dout:
        wc = jnp.pad(wc, ((0, 0), (0, dout_pad - dout)))
        if use_bias:
            bf = jnp.pad(bf, ((0, 0), (0, dout_pad - dout)))

    xc = x.astype(cdtype)
    Bp = _round_up(B, 8)
    if Bp != B:
        xc = jnp.pad(xc, ((0, Bp - B), (0, 0)))

    tile_k = _pick_tile_k(K)
    # LayerNorm needs the full row resident -> keep N un-tiled for LN layers.
    tile_n = dout_pad if use_layer_norm else _pick_tile_n(dout_pad,
                                                          max_tile_n or 512)

    csz = cdtype.itemsize
    osz = jnp.dtype(out_dtype).itemsize
    per_row = 2 * tile_k * csz + 2 * tile_n * osz + tile_n * 4
    fixed = 2 * tile_k * tile_n * csz + 6 * tile_n * 4 + (2 << 20)
    tile_b = _pick_tile_b_vmem(Bp, per_row, fixed, _VMEM_LIMIT_CAP - (4 << 20))

    operands = [xc, wc]
    in_specs = [pl.BlockSpec((tile_b, tile_k), lambda i, j, k: (i, k)),
                pl.BlockSpec((tile_k, tile_n), lambda i, j, k: (k, j))]
    if use_bias:
        operands.append(bf)
        in_specs.append(pl.BlockSpec((1, tile_n), lambda i, j, k: (0, j)))
    if use_layer_norm:
        operands.append(gamma.astype(jnp.float32).reshape(1, -1))
        operands.append(beta.astype(jnp.float32).reshape(1, -1))
        in_specs += [pl.BlockSpec((1, tile_n), lambda i, j, k: (0, j)),
                     pl.BlockSpec((1, tile_n), lambda i, j, k: (0, j))]

    kernel = functools.partial(_tiled_linear_kernel, use_bias=use_bias,
                               use_layer_norm=use_layer_norm, use_relu=use_relu)

    vmem_est = fixed + tile_b * per_row
    vmem_limit = int(min(max(int(1.25 * vmem_est) + (4 << 20), 16 << 20),
                         _VMEM_LIMIT_CAP))

    out = pl.pallas_call(
        kernel,
        out_shape=jax.ShapeDtypeStruct((Bp, dout_pad), out_dtype),
        grid=(Bp // tile_b, dout_pad // tile_n, K // tile_k),
        in_specs=in_specs,
        out_specs=pl.BlockSpec((tile_b, tile_n), lambda i, j, k: (i, j)),
        scratch_shapes=[pltpu.VMEM((tile_b, tile_n), jnp.float32)],
        compiler_params=pltpu.CompilerParams(
            dimension_semantics=("parallel", "parallel", "arbitrary"),
            vmem_limit_bytes=vmem_limit),
        interpret=interpret,
    )(*operands)

    if Bp != B:
        out = out[:B]
    if dout_pad != dout:
        out = out[:, :dout]
    return out


# ----------------------------------------------------------------------------
# Parameter construction (deterministic, synthetic — no checkpoint loading)
# ----------------------------------------------------------------------------
def init_mlp_params(key, sizes, use_biases=True, init_scaling=0.1):
    """Mirrors offbench MLP: hidden layers = Linear+LayerNorm+ReLU,
    last layer = Linear + Identity (no LayerNorm)."""
    layers = []
    n_layers = len(sizes) - 1
    for i in range(n_layers):
        key, kw = jax.random.split(key)
        din, dout = sizes[i], sizes[i + 1]
        w = init_scaling * jax.random.normal(kw, (din, dout), jnp.float32)
        layers.append(dict(
            w=w,
            b=jnp.zeros((dout,), jnp.float32),
            gamma=jnp.ones((dout,), jnp.float32),
            beta=jnp.zeros((dout,), jnp.float32),
            use_bias=use_biases,
            use_layer_norm=(i != n_layers - 1),
            use_relu=(i != n_layers - 1),   # hidden activation = ReLU, output = Identity
        ))
    return layers
    # TODO(synk): dropout only acts in train() mode; eval-mode (identity) semantics implemented.


def mlp_forward_prepared(prepared, layers, x, *, interpret=False):
    """Fused whole-MLP kernel when the (padded) params fit in VMEM, else a
    per-layer B/N/K-tiled kernel."""
    if prepared["param_bytes"] <= _FUSED_PARAM_BUDGET:
        return mlp_forward_fused(prepared, x, interpret=interpret)
    out = x
    for lyr in layers:
        out = fused_linear_tiled(
            out, lyr["w"],
            lyr["b"] if lyr.get("use_bias", True) else None,
            lyr["gamma"] if lyr["use_layer_norm"] else None,
            lyr["beta"] if lyr["use_layer_norm"] else None,
            use_layer_norm=lyr["use_layer_norm"],
            use_relu=lyr["use_relu"],
            compute_dtype=prepared["compute_dtype"],
            interpret=interpret)
    return out


def mlp_forward(layers, x, *, compute_dtype=DEFAULT_COMPUTE_DTYPE):
    prepared = prepare_mlp(layers, compute_dtype)
    return mlp_forward_prepared(prepared, layers, x)


class MLPDict:
    """JAX analogue of MLP_DICT: dict of MLPs, forward(key, x) dispatches.
    Prepared (cast/padded) parameters are cached per entry and compute dtype."""

    def __init__(self, mlps, compute_dtype=DEFAULT_COMPUTE_DTYPE):
        self.mlps = mlps
        self.compute_dtype = jnp.dtype(compute_dtype)
        self._prepared = {}

    def __getitem__(self, key):
        return self.mlps[key]

    def __len__(self):
        return len(self.mlps)

    def items(self):
        return self.mlps.items()

    def _get_prepared(self, key, compute_dtype):
        cd = jnp.dtype(compute_dtype)
        cache_key = (key, cd.name)
        if cache_key not in self._prepared:
            self._prepared[cache_key] = prepare_mlp(self.mlps[key], cd)
        return self._prepared[cache_key]

    def forward(self, key, x, *, compute_dtype=None):
        # matches the effective (last-defined) MLP_DICT.forward(key, x)
        cd = self.compute_dtype if compute_dtype is None else jnp.dtype(compute_dtype)
        prepared = self._get_prepared(key, cd)
        return mlp_forward_prepared(prepared, self.mlps[key], x)

    def forward_all(self, x, *, compute_dtype=None):
        # matches the first (shadowed) MLP_DICT.forward(x) -> dict of outputs
        # TODO(synk): many tiny same-shaped heads could be fused into a single
        # pallas_call (concat weights along N) to fill the MXU and amortize
        # launch overhead; kept per-entry for generality.
        return {k: self.forward(k, x, compute_dtype=compute_dtype)
                for k in self.mlps}
    # TODO(synk): ResidualMLP / LinearBlock residual variant not implemented
    # (LinearBlock definition not provided in the spec).


# ----------------------------------------------------------------------------
# Pure-JAX reference for correctness check
# ----------------------------------------------------------------------------
def mlp_forward_ref(layers, x):
    for lyr in layers:
        y = x @ lyr["w"]
        if lyr.get("use_bias", True):
            y = y + lyr["b"]
        if lyr["use_layer_norm"]:
            mean = jnp.mean(y, axis=-1, keepdims=True)
            var = jnp.mean((y - mean) ** 2, axis=-1, keepdims=True)
            y = (y - mean) * jax.lax.rsqrt(var + LN_EPS)
            y = y * lyr["gamma"] + lyr["beta"]
        if lyr["use_relu"]:
            y = jnp.maximum(y, 0.0)
        x = y
    return x


if __name__ == "__main__":
    root = jax.random.PRNGKey(0)
    k_actor, k_critic, k_x, k_big, k_bx = jax.random.split(root, 5)

    # two small MLPs in the dict (e.g. an "actor" and a "critic")
    mlp_dict = MLPDict({
        "actor": init_mlp_params(k_actor, sizes=[16, 32, 32, 8]),
        "critic": init_mlp_params(k_critic, sizes=[16, 32, 1]),
    })

    # layout: x is [batch, features]; batch 16 -> 2 parallel grid steps
    x = jax.random.normal(k_x, (16, 16), jnp.float32)

    ok = True

    # 1) fused whole-MLP kernel, default bf16 MXU operands (f32 accum / LN)
    for key in ("actor", "critic"):
        out = mlp_dict.forward(key, x)
        jax.block_until_ready(out)
        ref = mlp_forward_ref(mlp_dict[key], x)
        if not jnp.allclose(out, ref, atol=3e-2, rtol=3e-2):
            ok = False
            print(f"MISMATCH (fused bf16) key={key}: max err "
                  f"{float(jnp.max(jnp.abs(out - ref)))}")

    # 2) fused whole-MLP kernel, explicit f32 compute (tight tolerance)
    for key in ("actor", "critic"):
        out = mlp_dict.forward(key, x, compute_dtype=jnp.float32)
        jax.block_until_ready(out)
        ref = mlp_forward_ref(mlp_dict[key], x)
        if not jnp.allclose(out, ref, atol=1e-4, rtol=1e-4):
            ok = False
            print(f"MISMATCH (fused f32) key={key}: max err "
                  f"{float(jnp.max(jnp.abs(out - ref)))}")

    # 3) forward_all (shadowed torch signature): dict of outputs
    outs = mlp_dict.forward_all(x)
    jax.block_until_ready(outs["actor"])
    jax.block_until_ready(outs["critic"])

    # 4) large-layer fallback: B/K-tiled kernel with LayerNorm (N un-tiled)
    big_layer = init_mlp_params(k_big, sizes=[1024, 256])[0]
    big_layer["use_layer_norm"] = True
    big_layer["use_relu"] = True
    xb = jax.random.normal(k_bx, (128, 1024), jnp.float32)
    out_t = fused_linear_tiled(xb, big_layer["w"], big_layer["b"],
                               big_layer["gamma"], big_layer["beta"],
                               use_layer_norm=True, use_relu=True,
                               compute_dtype=jnp.float32)
    jax.block_until_ready(out_t)
    ref_t = mlp_forward_ref([big_layer], xb)
    if not jnp.allclose(out_t, ref_t, atol=5e-3, rtol=5e-3):
        ok = False
        print(f"MISMATCH (tiled LN): max err "
              f"{float(jnp.max(jnp.abs(out_t - ref_t)))}")

    # 5) fallback with N tiling exercised (no LN, forced tile_n=128 -> 2 N blocks)
    lin_layer = dict(big_layer)
    lin_layer["use_layer_norm"] = False
    lin_layer["use_relu"] = True
    out_n = fused_linear_tiled(xb, lin_layer["w"], lin_layer["b"],
                               use_layer_norm=False, use_relu=True,
                               compute_dtype=jnp.float32, max_tile_n=128)
    jax.block_until_ready(out_n)
    ref_n = mlp_forward_ref([lin_layer], xb)
    if not jnp.allclose(out_n, ref_n, atol=5e-3, rtol=5e-3):
        ok = False
        print(f"MISMATCH (tiled N): max err "
              f"{float(jnp.max(jnp.abs(out_n - ref_n)))}")

    if ok:
        print("KERNEL_OK")
</pallas_src>

<mosaic_0001>
module attributes {stable_mosaic.version = 11 : i64} {
  func.func @_fused_mlp_kernel(%arg0: i32, %arg1: memref<8x16xbf16, #tpu.memory_space<vmem>>, %arg2: memref<16x32xbf16, #tpu.memory_space<vmem>>, %arg3: memref<1x32xf32, #tpu.memory_space<vmem>>, %arg4: memref<1x32xf32, #tpu.memory_space<vmem>>, %arg5: memref<1x32xf32, #tpu.memory_space<vmem>>, %arg6: memref<32x32xbf16, #tpu.memory_space<vmem>>, %arg7: memref<1x32xf32, #tpu.memory_space<vmem>>, %arg8: memref<1x32xf32, #tpu.memory_space<vmem>>, %arg9: memref<1x32xf32, #tpu.memory_space<vmem>>, %arg10: memref<32x128xbf16, #tpu.memory_space<vmem>>, %arg11: memref<1x128xf32, #tpu.memory_space<vmem>>, %arg12: memref<8x128xf32, #tpu.memory_space<vmem>>) attributes {dimension_semantics = [#tpu.dimension_semantics<parallel>], iteration_bounds = array<i64: 2>, scalar_prefetch = 0 : i64, scratch_operands = 0 : i64, tpu.core_type = #tpu.core_type<tc>, window_params = [{transform_indices = @transform_0, window_bounds = array<i64: 8, 16>}, {pipeline_mode = #tpu.pipeline_mode<synchronous>, transform_indices = @transform_1, window_bounds = array<i64: 16, 32>}, {pipeline_mode = #tpu.pipeline_mode<synchronous>, transform_indices = @transform_2, window_bounds = array<i64: 1, 32>}, {pipeline_mode = #tpu.pipeline_mode<synchronous>, transform_indices = @transform_3, window_bounds = array<i64: 1, 32>}, {pipeline_mode = #tpu.pipeline_mode<synchronous>, transform_indices = @transform_4, window_bounds = array<i64: 1, 32>}, {pipeline_mode = #tpu.pipeline_mode<synchronous>, transform_indices = @transform_5, window_bounds = array<i64: 32, 32>}, {pipeline_mode = #tpu.pipeline_mode<synchronous>, transform_indices = @transform_6, window_bounds = array<i64: 1, 32>}, {pipeline_mode = #tpu.pipeline_mode<synchronous>, transform_indices = @transform_7, window_bounds = array<i64: 1, 32>}, {pipeline_mode = #tpu.pipeline_mode<synchronous>, transform_indices = @transform_8, window_bounds = array<i64: 1, 32>}, {pipeline_mode = #tpu.pipeline_mode<synchronous>, transform_indices = @transform_9, window_bounds = array<i64: 32, 128>}, {pipeline_mode = #tpu.pipeline_mode<synchronous>, transform_indices = @transform_10, window_bounds = array<i64: 1, 128>}, {transform_indices = @transform_11, window_bounds = array<i64: 8, 128>}]} {
    %c0 = arith.constant 0 : index
    %c0_0 = arith.constant 0 : index
    %0 = vector.load %arg1[%c0, %c0_0] : memref<8x16xbf16, #tpu.memory_space<vmem>>, vector<8x16xbf16>
    %c0_1 = arith.constant 0 : index
    %c0_2 = arith.constant 0 : index
    %1 = vector.load %arg2[%c0_1, %c0_2] : memref<16x32xbf16, #tpu.memory_space<vmem>>, vector<16x32xbf16>
    %cst = arith.constant dense<0.000000e+00> : vector<8x32xf32>
    %2 = tpu.matmul %0, %1, %cst {dimension_numbers = #tpu.dot_dimension_numbers<[1], [0], [0], [1], [0, 0, 1, 1], [], []>} : vector<8x16xbf16>, vector<16x32xbf16>, vector<8x32xf32> -> vector<8x32xf32>
    %c0_3 = arith.constant 0 : index
    %c0_4 = arith.constant 0 : index
    %3 = vector.load %arg3[%c0_3, %c0_4] : memref<1x32xf32, #tpu.memory_space<vmem>>, vector<1x32xf32>
    %4 = vector.broadcast %3 : vector<1x32xf32> to vector<8x32xf32>
    %5 = arith.addf %2, %4 : vector<8x32xf32>
    %c0_5 = arith.constant 0 : index
    %c0_6 = arith.constant 0 : index
    %6 = vector.load %arg4[%c0_5, %c0_6] : memref<1x32xf32, #tpu.memory_space<vmem>>, vector<1x32xf32>
    %c0_7 = arith.constant 0 : index
    %c0_8 = arith.constant 0 : index
    %7 = vector.load %arg5[%c0_7, %c0_8] : memref<1x32xf32, #tpu.memory_space<vmem>>, vector<1x32xf32>
    %cst_9 = arith.constant dense<0.000000e+00> : vector<8xf32>
    %8 = vector.multi_reduction <add>, %5, %cst_9 [1] : vector<8x32xf32> to vector<8xf32>
    %9 = vector.shape_cast %8 : vector<8xf32> to vector<8x1xf32>
    %cst_10 = arith.constant 3.200000e+01 : f32
    %10 = vector.broadcast %cst_10 : f32 to vector<8x1xf32>
    %11 = arith.divf %9, %10 : vector<8x1xf32>
    %12 = vector.broadcast %11 : vector<8x1xf32> to vector<8x32xf32>
    %13 = arith.subf %5, %12 : vector<8x32xf32>
    %14 = arith.mulf %13, %13 : vector<8x32xf32>
    %cst_11 = arith.constant dense<0.000000e+00> : vector<8xf32>
    %15 = vector.multi_reduction <add>, %14, %cst_11 [1] : vector<8x32xf32> to vector<8xf32>
    %16 = vector.shape_cast %15 : vector<8xf32> to vector<8x1xf32>
    %cst_12 = arith.constant 3.200000e+01 : f32
    %17 = vector.broadcast %cst_12 : f32 to vector<8x1xf32>
    %18 = arith.divf %16, %17 : vector<8x1xf32>
    %cst_13 = arith.constant 9.99999974E-6 : f32
    %19 = vector.broadcast %cst_13 : f32 to vector<8x1xf32>
    %20 = arith.addf %18, %19 : vector<8x1xf32>
    %21 = math.rsqrt %20 : vector<8x1xf32>
    %22 = vector.broadcast %21 : vector<8x1xf32> to vector<8x32xf32>
    %23 = arith.mulf %13, %22 : vector<8x32xf32>
    %24 = vector.broadcast %6 : vector<1x32xf32> to vector<8x32xf32>
    %25 = arith.mulf %23, %24 : vector<8x32xf32>
    %26 = vector.broadcast %7 : vector<1x32xf32> to vector<8x32xf32>
    %27 = arith.addf %25, %26 : vector<8x32xf32>
    %cst_14 = arith.constant 0.000000e+00 : f32
    %28 = vector.broadcast %cst_14 : f32 to vector<8x32xf32>
    %29 = arith.maximumf %27, %28 : vector<8x32xf32>
    %30 = arith.truncf %29 : vector<8x32xf32> to vector<8x32xbf16>
    %c0_15 = arith.constant 0 : index
    %c0_16 = arith.constant 0 : index
    %31 = vector.load %arg6[%c0_15, %c0_16] : memref<32x32xbf16, #tpu.memory_space<vmem>>, vector<32x32xbf16>
    %cst_17 = arith.constant dense<0.000000e+00> : vector<8x32xf32>
    %32 = tpu.matmul %30, %31, %cst_17 {dimension_numbers = #tpu.dot_dimension_numbers<[1], [0], [0], [1], [0, 0, 1, 1], [], []>} : vector<8x32xbf16>, vector<32x32xbf16>, vector<8x32xf32> -> vector<8x32xf32>
    %c0_18 = arith.constant 0 : index
    %c0_19 = arith.constant 0 : index
    %33 = vector.load %arg7[%c0_18, %c0_19] : memref<1x32xf32, #tpu.memory_space<vmem>>, vector<1x32xf32>
    %34 = vector.broadcast %33 : vector<1x32xf32> to vector<8x32xf32>
    %35 = arith.addf %32, %34 : vector<8x32xf32>
    %c0_20 = arith.constant 0 : index
    %c0_21 = arith.constant 0 : index
    %36 = vector.load %arg8[%c0_20, %c0_21] : memref<1x32xf32, #tpu.memory_space<vmem>>, vector<1x32xf32>
    %c0_22 = arith.constant 0 : index
    %c0_23 = arith.constant 0 : index
    %37 = vector.load %arg9[%c0_22, %c0_23] : memref<1x32xf32, #tpu.memory_space<vmem>>, vector<1x32xf32>
    %cst_24 = arith.constant dense<0.000000e+00> : vector<8xf32>
    %38 = vector.multi_reduction <add>, %35, %cst_24 [1] : vector<8x32xf32> to vector<8xf32>
    %39 = vector.shape_cast %38 : vector<8xf32> to vector<8x1xf32>
    %cst_25 = arith.constant 3.200000e+01 : f32
    %40 = vector.broadcast %cst_25 : f32 to vector<8x1xf32>
    %41 = arith.divf %39, %40 : vector<8x1xf32>
    %42 = vector.broadcast %41 : vector<8x1xf32> to vector<8x32xf32>
    %43 = arith.subf %35, %42 : vector<8x32xf32>
    %44 = arith.mulf %43, %43 : vector<8x32xf32>
    %cst_26 = arith.constant dense<0.000000e+00> : vector<8xf32>
    %45 = vector.multi_reduction <add>, %44, %cst_26 [1] : vector<8x32xf32> to vector<8xf32>
    %46 = vector.shape_cast %45 : vector<8xf32> to vector<8x1xf32>
    %cst_27 = arith.constant 3.200000e+01 : f32
    %47 = vector.broadcast %cst_27 : f32 to vector<8x1xf32>
    %48 = arith.divf %46, %47 : vector<8x1xf32>
    %cst_28 = arith.constant 9.99999974E-6 : f32
    %49 = vector.broadcast %cst_28 : f32 to vector<8x1xf32>
    %50 = arith.addf %48, %49 : vector<8x1xf32>
    %51 = math.rsqrt %50 : vector<8x1xf32>
    %52 = vector.broadcast %51 : vector<8x1xf32> to vector<8x32xf32>
    %53 = arith.mulf %43, %52 : vector<8x32xf32>
    %54 = vector.broadcast %36 : vector<1x32xf32> to vector<8x32xf32>
    %55 = arith.mulf %53, %54 : vector<8x32xf32>
    %56 = vector.broadcast %37 : vector<1x32xf32> to vector<8x32xf32>
    %57 = arith.addf %55, %56 : vector<8x32xf32>
    %cst_29 = arith.constant 0.000000e+00 : f32
    %58 = vector.broadcast %cst_29 : f32 to vector<8x32xf32>
    %59 = arith.maximumf %57, %58 : vector<8x32xf32>
    %60 = arith.truncf %59 : vector<8x32xf32> to vector<8x32xbf16>
    %c0_30 = arith.constant 0 : index
    %c0_31 = arith.constant 0 : index
    %61 = vector.load %arg10[%c0_30, %c0_31] : memref<32x128xbf16, #tpu.memory_space<vmem>>, vector<32x128xbf16>
    %cst_32 = arith.constant dense<0.000000e+00> : vector<8x128xf32>
    %62 = tpu.matmul %60, %61, %cst_32 {dimension_numbers = #tpu.dot_dimension_numbers<[1], [0], [0], [1], [0, 0, 1, 1], [], []>} : vector<8x32xbf16>, vector<32x128xbf16>, vector<8x128xf32> -> vector<8x128xf32>
    %c0_33 = arith.constant 0 : index
    %c0_34 = arith.constant 0 : index
    %63 = vector.load %arg11[%c0_33, %c0_34] : memref<1x128xf32, #tpu.memory_space<vmem>>, vector<1x128xf32>
    %64 = vector.broadcast %63 : vector<1x128xf32> to vector<8x128xf32>
    %65 = arith.addf %62, %64 : vector<8x128xf32>
    %c0_35 = arith.constant 0 : index
    %c0_36 = arith.constant 0 : index
    %66 = vector.load %arg12[%c0_35, %c0_36] : memref<8x128xf32, #tpu.memory_space<vmem>>, vector<8x128xf32>
    tpu.vector_store %arg12[%c0_35, %c0_36], %65 {strides = array<i32>} : memref<8x128xf32, #tpu.memory_space<vmem>>, vector<8x128xf32>,
    return
  }
  func.func @transform_0(%arg0: i32) -> (i32, i32) {
    %c0_i32 = arith.constant 0 : i32
    %c0_i32_0 = arith.constant 0 : i32
    return %arg0, %c0_i32 : i32, i32
  }
  func.func @transform_1(%arg0: i32) -> (i32, i32) {
    %c0_i32 = arith.constant 0 : i32
    %c0_i32_0 = arith.constant 0 : i32
    %c0_i32_1 = arith.constant 0 : i32
    return %c0_i32, %c0_i32_0 : i32, i32
  }
  func.func @transform_2(%arg0: i32) -> (i32, i32) {
    %c0_i32 = arith.constant 0 : i32
    %c0_i32_0 = arith.constant 0 : i32
    %c0_i32_1 = arith.constant 0 : i32
    return %c0_i32, %c0_i32_0 : i32, i32
  }
  func.func @transform_3(%arg0: i32) -> (i32, i32) {
    %c0_i32 = arith.constant 0 : i32
    %c0_i32_0 = arith.constant 0 : i32
    %c0_i32_1 = arith.constant 0 : i32
    return %c0_i32, %c0_i32_0 : i32, i32
  }
  func.func @transform_4(%arg0: i32) -> (i32, i32) {
    %c0_i32 = arith.constant 0 : i32
    %c0_i32_0 = arith.constant 0 : i32
    %c0_i32_1 = arith.constant 0 : i32
    return %c0_i32, %c0_i32_0 : i32, i32
  }
  func.func @transform_5(%arg0: i32) -> (i32, i32) {
    %c0_i32 = arith.constant 0 : i32
    %c0_i32_0 = arith.constant 0 : i32
    %c0_i32_1 = arith.constant 0 : i32
    return %c0_i32, %c0_i32_0 : i32, i32
  }
  func.func @transform_6(%arg0: i32) -> (i32, i32) {
    %c0_i32 = arith.constant 0 : i32
    %c0_i32_0 = arith.constant 0 : i32
    %c0_i32_1 = arith.constant 0 : i32
    return %c0_i32, %c0_i32_0 : i32, i32
  }
  func.func @transform_7(%arg0: i32) -> (i32, i32) {
    %c0_i32 = arith.constant 0 : i32
    %c0_i32_0 = arith.constant 0 : i32
    %c0_i32_1 = arith.constant 0 : i32
    return %c0_i32, %c0_i32_0 : i32, i32
  }
  func.func @transform_8(%arg0: i32) -> (i32, i32) {
    %c0_i32 = arith.constant 0 : i32
    %c0_i32_0 = arith.constant 0 : i32
    %c0_i32_1 = arith.constant 0 : i32
    return %c0_i32, %c0_i32_0 : i32, i32
  }
  func.func @transform_9(%arg0: i32) -> (i32, i32) {
    %c0_i32 = arith.constant 0 : i32
    %c0_i32_0 = arith.constant 0 : i32
    %c0_i32_1 = arith.constant 0 : i32
    return %c0_i32, %c0_i32_0 : i32, i32
  }
  func.func @transform_10(%arg0: i32) -> (i32, i32) {
    %c0_i32 = arith.constant 0 : i32
    %c0_i32_0 = arith.constant 0 : i32
    %c0_i32_1 = arith.constant 0 : i32
    return %c0_i32, %c0_i32_0 : i32, i32
  }
  func.func @transform_11(%arg0: i32) -> (i32, i32) {
    %c0_i32 = arith.constant 0 : i32
    %c0_i32_0 = arith.constant 0 : i32
    return %arg0, %c0_i32 : i32, i32
  }
}

module attributes {stable_mosaic.version = 11 : i64} {
  func.func @_fused_mlp_kernel(%arg0: i32, %arg1: memref<8x16xbf16, #tpu.memory_space<vmem>>, %arg2: memref<16x32xbf16, #tpu.memory_space<vmem>>, %arg3: memref<1x32xf32, #tpu.memory_space<vmem>>, %arg4: memref<1x32xf32, #tpu.memory_space<vmem>>, %arg5: memref<1x32xf32, #tpu.memory_space<vmem>>, %arg6: memref<32x32xbf16, #tpu.memory_space<vmem>>, %arg7: memref<1x32xf32, #tpu.memory_space<vmem>>, %arg8: memref<1x32xf32, #tpu.memory_space<vmem>>, %arg9: memref<1x32xf32, #tpu.memory_space<vmem>>, %arg10: memref<32x128xbf16, #tpu.memory_space<vmem>>, %arg11: memref<1x128xf32, #tpu.memory_space<vmem>>, %arg12: memref<8x128xf32, #tpu.memory_space<vmem>>) attributes {dimension_semantics = [#tpu.dimension_semantics<parallel>], iteration_bounds = array<i64: 2>, scalar_prefetch = 0 : i64, scratch_operands = 0 : i64, tpu.core_type = #tpu.core_type<tc>, window_params = [{transform_indices = @transform_0, window_bounds = array<i64: 8, 16>}, {pipeline_mode = #tpu.pipeline_mode<synchronous>, transform_indices = @transform_1, window_bounds = array<i64: 16, 32>}, {pipeline_mode = #tpu.pipeline_mode<synchronous>, transform_indices = @transform_2, window_bounds = array<i64: 1, 32>}, {pipeline_mode = #tpu.pipeline_mode<synchronous>, transform_indices = @transform_3, window_bounds = array<i64: 1, 32>}, {pipeline_mode = #tpu.pipeline_mode<synchronous>, transform_indices = @transform_4, window_bounds = array<i64: 1, 32>}, {pipeline_mode = #tpu.pipeline_mode<synchronous>, transform_indices = @transform_5, window_bounds = array<i64: 32, 32>}, {pipeline_mode = #tpu.pipeline_mode<synchronous>, transform_indices = @transform_6, window_bounds = array<i64: 1, 32>}, {pipeline_mode = #tpu.pipeline_mode<synchronous>, transform_indices = @transform_7, window_bounds = array<i64: 1, 32>}, {pipeline_mode = #tpu.pipeline_mode<synchronous>, transform_indices = @transform_8, window_bounds = array<i64: 1, 32>}, {pipeline_mode = #tpu.pipeline_mode<synchronous>, transform_indices = @transform_9, window_bounds = array<i64: 32, 128>}, {pipeline_mode = #tpu.pipeline_mode<synchronous>, transform_indices = @transform_10, window_bounds = array<i64: 1, 128>}, {transform_indices = @transform_11, window_bounds = array<i64: 8, 128>}]} {
    %c0 = arith.constant 0 : index
    %c0_0 = arith.constant 0 : index
    %0 = vector.load %arg1[%c0, %c0_0] : memref<8x16xbf16, #tpu.memory_space<vmem>>, vector<8x16xbf16>
    %c0_1 = arith.constant 0 : index
    %c0_2 = arith.constant 0 : index
    %1 = vector.load %arg2[%c0_1, %c0_2] : memref<16x32xbf16, #tpu.memory_space<vmem>>, vector<16x32xbf16>
    %cst = arith.constant dense<0.000000e+00> : vector<8x32xf32>
    %2 = tpu.matmul %0, %1, %cst {dimension_numbers = #tpu.dot_dimension_numbers<[1], [0], [0], [1], [0, 0, 1, 1], [], []>} : vector<8x16xbf16>, vector<16x32xbf16>, vector<8x32xf32> -> vector<8x32xf32>
    %c0_3 = arith.constant 0 : index
    %c0_4 = arith.constant 0 : index
    %3 = vector.load %arg3[%c0_3, %c0_4] : memref<1x32xf32, #tpu.memory_space<vmem>>, vector<1x32xf32>
    %4 = vector.broadcast %3 : vector<1x32xf32> to vector<8x32xf32>
    %5 = arith.addf %2, %4 : vector<8x32xf32>
    %c0_5 = arith.constant 0 : index
    %c0_6 = arith.constant 0 : index
    %6 = vector.load %arg4[%c0_5, %c0_6] : memref<1x32xf32, #tpu.memory_space<vmem>>, vector<1x32xf32>
    %c0_7 = arith.constant 0 : index
    %c0_8 = arith.constant 0 : index
    %7 = vector.load %arg5[%c0_7, %c0_8] : memref<1x32xf32, #tpu.memory_space<vmem>>, vector<1x32xf32>
    %cst_9 = arith.constant dense<0.000000e+00> : vector<8xf32>
    %8 = vector.multi_reduction <add>, %5, %cst_9 [1] : vector<8x32xf32> to vector<8xf32>
    %9 = vector.shape_cast %8 : vector<8xf32> to vector<8x1xf32>
    %cst_10 = arith.constant 3.200000e+01 : f32
    %10 = vector.broadcast %cst_10 : f32 to vector<8x1xf32>
    %11 = arith.divf %9, %10 : vector<8x1xf32>
    %12 = vector.broadcast %11 : vector<8x1xf32> to vector<8x32xf32>
    %13 = arith.subf %5, %12 : vector<8x32xf32>
    %14 = arith.mulf %13, %13 : vector<8x32xf32>
    %cst_11 = arith.constant dense<0.000000e+00> : vector<8xf32>
    %15 = vector.multi_reduction <add>, %14, %cst_11 [1] : vector<8x32xf32> to vector<8xf32>
    %16 = vector.shape_cast %15 : vector<8xf32> to vector<8x1xf32>
    %cst_12 = arith.constant 3.200000e+01 : f32
    %17 = vector.broadcast %cst_12 : f32 to vector<8x1xf32>
    %18 = arith.divf %16, %17 : vector<8x1xf32>
    %cst_13 = arith.constant 9.99999974E-6 : f32
    %19 = vector.broadcast %cst_13 : f32 to vector<8x1xf32>
    %20 = arith.addf %18, %19 : vector<8x1xf32>
    %21 = math.rsqrt %20 : vector<8x1xf32>
    %22 = vector.broadcast %21 : vector<8x1xf32> to vector<8x32xf32>
    %23 = arith.mulf %13, %22 : vector<8x32xf32>
    %24 = vector.broadcast %6 : vector<1x32xf32> to vector<8x32xf32>
    %25 = arith.mulf %23, %24 : vector<8x32xf32>
    %26 = vector.broadcast %7 : vector<1x32xf32> to vector<8x32xf32>
    %27 = arith.addf %25, %26 : vector<8x32xf32>
    %cst_14 = arith.constant 0.000000e+00 : f32
    %28 = vector.broadcast %cst_14 : f32 to vector<8x32xf32>
    %29 = arith.maximumf %27, %28 : vector<8x32xf32>
    %30 = arith.truncf %29 : vector<8x32xf32> to vector<8x32xbf16>
    %c0_15 = arith.constant 0 : index
    %c0_16 = arith.constant 0 : index
    %31 = vector.load %arg6[%c0_15, %c0_16] : memref<32x32xbf16, #tpu.memory_space<vmem>>, vector<32x32xbf16>
    %cst_17 = arith.constant dense<0.000000e+00> : vector<8x32xf32>
    %32 = tpu.matmul %30, %31, %cst_17 {dimension_numbers = #tpu.dot_dimension_numbers<[1], [0], [0], [1], [0, 0, 1, 1], [], []>} : vector<8x32xbf16>, vector<32x32xbf16>, vector<8x32xf32> -> vector<8x32xf32>
    %c0_18 = arith.constant 0 : index
    %c0_19 = arith.constant 0 : index
    %33 = vector.load %arg7[%c0_18, %c0_19] : memref<1x32xf32, #tpu.memory_space<vmem>>, vector<1x32xf32>
    %34 = vector.broadcast %33 : vector<1x32xf32> to vector<8x32xf32>
    %35 = arith.addf %32, %34 : vector<8x32xf32>
    %c0_20 = arith.constant 0 : index
    %c0_21 = arith.constant 0 : index
    %36 = vector.load %arg8[%c0_20, %c0_21] : memref<1x32xf32, #tpu.memory_space<vmem>>, vector<1x32xf32>
    %c0_22 = arith.constant 0 : index
    %c0_23 = arith.constant 0 : index
    %37 = vector.load %arg9[%c0_22, %c0_23] : memref<1x32xf32, #tpu.memory_space<vmem>>, vector<1x32xf32>
    %cst_24 = arith.constant dense<0.000000e+00> : vector<8xf32>
    %38 = vector.multi_reduction <add>, %35, %cst_24 [1] : vector<8x32xf32> to vector<8xf32>
    %39 = vector.shape_cast %38 : vector<8xf32> to vector<8x1xf32>
    %cst_25 = arith.constant 3.200000e+01 : f32
    %40 = vector.broadcast %cst_25 : f32 to vector<8x1xf32>
    %41 = arith.divf %39, %40 : vector<8x1xf32>
    %42 = vector.broadcast %41 : vector<8x1xf32> to vector<8x32xf32>
    %43 = arith.subf %35, %42 : vector<8x32xf32>
    %44 = arith.mulf %43, %43 : vector<8x32xf32>
    %cst_26 = arith.constant dense<0.000000e+00> : vector<8xf32>
    %45 = vector.multi_reduction <add>, %44, %cst_26 [1] : vector<8x32xf32> to vector<8xf32>
    %46 = vector.shape_cast %45 : vector<8xf32> to vector<8x1xf32>
    %cst_27 = arith.constant 3.200000e+01 : f32
    %47 = vector.broadcast %cst_27 : f32 to vector<8x1xf32>
    %48 = arith.divf %46, %47 : vector<8x1xf32>
    %cst_28 = arith.constant 9.99999974E-6 : f32
    %49 = vector.broadcast %cst_28 : f32 to vector<8x1xf32>
    %50 = arith.addf %48, %49 : vector<8x1xf32>
    %51 = math.rsqrt %50 : vector<8x1xf32>
    %52 = vector.broadcast %51 : vector<8x1xf32> to vector<8x32xf32>
    %53 = arith.mulf %43, %52 : vector<8x32xf32>
    %54 = vector.broadcast %36 : vector<1x32xf32> to vector<8x32xf32>
    %55 = arith.mulf %53, %54 : vector<8x32xf32>
    %56 = vector.broadcast %37 : vector<1x32xf32> to vector<8x32xf32>
    %57 = arith.addf %55, %56 : vector<8x32xf32>
    %cst_29 = arith.constant 0.000000e+00 : f32
    %58 = vector.broadcast %cst_29 : f32 to vector<8x32xf32>
    %59 = arith.maximumf %57, %58 : vector<8x32xf32>
    %60 = arith.truncf %59 : vector<8x32xf32> to vector<8x32xbf16>
    %c0_30 = arith.constant 0 : index
    %c0_31 = arith.constant 0 : index
    %61 = vector.load %arg10[%c0_30, %c0_31] : memref<32x128xbf16, #tpu.memory_space<vmem>>, vector<32x128xbf16>
    %cst_32 = arith.constant dense<0.000000e+00> : vector<8x128xf32>
    %62 = tpu.matmul %60, %61, %cst_32 {dimension_numbers = #tpu.dot_dimension_numbers<[1], [0], [0], [1], [0, 0, 1, 1], [], []>} : vector<8x32xbf16>, vector<32x128xbf16>, vector<8x128xf32> -> vector<8x128xf32>
    %c0_33 = arith.constant 0 : index
    %c0_34 = arith.constant 0 : index
    %63 = vector.load %arg11[%c0_33, %c0_34] : memref<1x128xf32, #tpu.memory_space<vmem>>, vector<1x128xf32>
    %64 = vector.broadcast %63 : vector<1x128xf32> to vector<8x128xf32>
    %65 = arith.addf %62, %64 : vector<8x128xf32>
    %c0_35 = arith.constant 0 : index
    %c0_36 = arith.constant 0 : index
    %66 = vector.load %arg12[%c0_35, %c0_36] : memref<8x128xf32, #tpu.memory_space<vmem>>, vector<8x128xf32>
    tpu.vector_store %arg12[%c0_35, %c0_36], %65 {strides = array<i32>} : memref<8x128xf32, #tpu.memory_space<vmem>>, vector<8x128xf32>,
    return
  }
  func.func @transform_0(%arg0: i32) -> (i32, i32) {
    %c0_i32 = arith.constant 0 : i32
    %c0_i32_0 = arith.constant 0 : i32
    return %arg0, %c0_i32 : i32, i32
  }
  func.func @transform_1(%arg0: i32) -> (i32, i32) {
    %c0_i32 = arith.constant 0 : i32
    %c0_i32_0 = arith.constant 0 : i32
    %c0_i32_1 = arith.constant 0 : i32
    return %c0_i32, %c0_i32_0 : i32, i32
  }
  func.func @transform_2(%arg0: i32) -> (i32, i32) {
    %c0_i32 = arith.constant 0 : i32
    %c0_i32_0 = arith.constant 0 : i32
    %c0_i32_1 = arith.constant 0 : i32
    return %c0_i32, %c0_i32_0 : i32, i32
  }
  func.func @transform_3(%arg0: i32) -> (i32, i32) {
    %c0_i32 = arith.constant 0 : i32
    %c0_i32_0 = arith.constant 0 : i32
    %c0_i32_1 = arith.constant 0 : i32
    return %c0_i32, %c0_i32_0 : i32, i32
  }
  func.func @transform_4(%arg0: i32) -> (i32, i32) {
    %c0_i32 = arith.constant 0 : i32
    %c0_i32_0 = arith.constant 0 : i32
    %c0_i32_1 = arith.constant 0 : i32
    return %c0_i32, %c0_i32_0 : i32, i32
  }
  func.func @transform_5(%arg0: i32) -> (i32, i32) {
    %c0_i32 = arith.constant 0 : i32
    %c0_i32_0 = arith.constant 0 : i32
    %c0_i32_1 = arith.constant 0 : i32
    return %c0_i32, %c0_i32_0 : i32, i32
  }
  func.func @transform_6(%arg0: i32) -> (i32, i32) {
    %c0_i32 = arith.constant 0 : i32
    %c0_i32_0 = arith.constant 0 : i32
    %c0_i32_1 = arith.constant 0 : i32
    return %c0_i32, %c0_i32_0 : i32, i32
  }
  func.func @transform_7(%arg0: i32) -> (i32, i32) {
    %c0_i32 = arith.constant 0 : i32
    %c0_i32_0 = arith.constant 0 : i32
    %c0_i32_1 = arith.constant 0 : i32
    return %c0_i32, %c0_i32_0 : i32, i32
  }
  func.func @transform_8(%arg0: i32) -> (i32, i32) {
    %c0_i32 = arith.constant 0 : i32
    %c0_i32_0 = arith.constant 0 : i32
    %c0_i32_1 = arith.constant 0 : i32
    return %c0_i32, %c0_i32_0 : i32, i32
  }
  func.func @transform_9(%arg0: i32) -> (i32, i32) {
    %c0_i32 = arith.constant 0 : i32
    %c0_i32_0 = arith.constant 0 : i32
    %c0_i32_1 = arith.constant 0 : i32
    return %c0_i32, %c0_i32_0 : i32, i32
  }
  func.func @transform_10(%arg0: i32) -> (i32, i32) {
    %c0_i32 = arith.constant 0 : i32
    %c0_i32_0 = arith.constant 0 : i32
    %c0_i32_1 = arith.constant 0 : i32
    return %c0_i32, %c0_i32_0 : i32, i32
  }
  func.func @transform_11(%arg0: i32) -> (i32, i32) {
    %c0_i32 = arith.constant 0 : i32
    %c0_i32_0 = arith.constant 0 : i32
    return %arg0, %c0_i32 : i32, i32
  }
}

</mosaic_0001>

<bundles_post_ra>
// kernel: tpu_custom_call.1
= control target key start
LH: loop header
LB: loop body
LE: loop exit
PB: predicated region body
PF: predicated region fallthrough
CT: control target
= control target key end

     0   :  { %s1681_s0 = inlined_call_operand.hbm [shape: bf16[16,16], index: 0, kind: input, shape index: {}]   ;;  %s1682_s1 = inlined_call_operand.hbm [shape: bf16[16,32], index: 1, kind: input, shape index: {}]   ;;  %s1683_s2 = inlined_call_operand.vmem [shape: f32[1,32], index: 2, kind: input, shape index: {}]   ;;  %s1684_s3 = inlined_call_operand.vmem [shape: f32[1,32], index: 3, kind: input, shape index: {}]   ;;  %s1685_s4 = inlined_call_operand.hbm [shape: f32[1,32], index: 4, kind: input, shape index: {}]   ;;  %s1686_s5 = inlined_call_operand.vmem [shape: bf16[32,32], index: 5, kind: input, shape index: {}]   ;;  %s1687_s6 = inlined_call_operand.hbm [shape: f32[1,32], index: 6, kind: input, shape index: {}]   ;;  %s1688_s7 = inlined_call_operand.hbm [shape: f32[1,32], index: 7, kind: input, shape index: {}]   ;;  %s1689_s8 = inlined_call_operand.hbm [shape: f32[1,32], index: 8, kind: input, shape index: {}]   ;;  %s1690_s9 = inlined_call_operand.vmem [shape: bf16[32,128], index: 9, kind: input, shape index: {}]   ;;  %s1691_s10 = inlined_call_operand.vmem [shape: f32[1,128], index: 10, kind: input, shape index: {}]   ;;  %s1692_s11 = inlined_call_operand.hbm [shape: f32[16,128], index: 11, kind: output, shape index: {}]  }
   0x1   :  { %1698 = sst [smem:[#allocation19_spill]] %s1690_s9 }
   0x2   :  { %1699 = sst [smem:[#allocation20_spill]] %s1691_s10 }
   0x3   :  { %1700 = sst [smem:[#allocation21_spill]] %s1692_s11 }
   0x4   :  { %16 = vsyncpa [#allocation3], 0 }
   0x5   :  { %18 = vsyncpa [#allocation3 + $0x1], 0 }
   0x6   :  { %19 = vsyncpa [#allocation6], 0 }
   0x7   :  { %20 = vsyncpa [#allocation9], 0 }
   0x8   :  { %21 = vsyncpa [#allocation12], 0 }
   0x9   :  { %22 = vsyncpa [#allocation4], 0 }
   0xa   :  { %24 = vsyncpa [#allocation4 + $0x1], 0  ;;  %s1355_s17 = smov 0   ;;  %s1357_s18 = smov 0  }
   0xb   :  { %s1359_s19 = smov 0   ;;  %s1361_s20 = smov 0  }
   0xc LB: > { %s1284_s21 = smov [#allocation5]   ;;  %s1376_s23 = sadd.s32 4294967295, %s1282_s20   ;;  %s1282_s20 = sphi %s1361_s20, %s1725_s20   ;;  %s1278_s19 = sphi %s1359_s19, %s1724_s19   ;;  %s1274_s18 = sphi %s1357_s18, %s1723_s18   ;;  %s1270_s17 = sphi %s1355_s17, %s1722_s17  }
   0xd   : > { %s309_s22 = sshll.u32 %s1284_s21, 4  ;;  %p858_p0 = scmp.ge.s32.totalorder %s1282_s20, 1  ;;  %s1381_s22 = int_to_ptr.vmem [resolvable:$true] %s309_s22 }
   0xe   : > { %p1695_p1 = scmp.eq.s32.totalorder %s1376_s23, 0  ;;  %p297_p2 = scmp.lt.s32.totalorder %s1282_s20, 3 }
   0xf   : > { %s1285_s25 = smov [#allocation8]   ;;  %s1286_s28 = smov [#allocation7]  }
  0x10   : > { %p1383_p3 = pnand %p858_p0, %p297_p2  ;;  %s343_s26 = sshll.u32 %s1285_s25, 4  ;;  %s1396_s26 = int_to_ptr.vmem [resolvable:$true] %s343_s26 }
  0x11   : > { %s329_s29 = sshll.u32 %s1286_s28, 4  ;;  %s1034_s13 = scalar_lea.hbm %s1682_s1, 128  ;;  %s1398_s29 = int_to_ptr.vmem [resolvable:$true] %s329_s29 }
  0x12   : > { %s1701_s24 = scalar_select %p1383_p3, 1, 0 }
  0x13   : > { %p948_p5 = pneg %p1383_p3  ;;  %p1035_p7 = scmp.ne.s32.totalorder %s1682_s1, %s1034_s13 }
  0x14   : > { %p1041_p11 = scmp.lt.u32.totalorder %s1034_s13, %s1682_s1 }
  0x15   : > { %p1392_p6 = pnand %p948_p5, %p1695_p1 }
  0x17   : > { %p1408_p8 = pneg %p1392_p6 }
  0x19   : > { %p1037_p9 = pnand %p1408_p8, %p1035_p7 }
  0x1b   : > { %p1038_p10 = pneg %p1037_p9 }
  0x1d   : > { %p1043_p12 = pnand %p1041_p11, %p1038_p10 }
  0x1f   : > { %1046 = shalt.err (!%p1043_p12)
}
  0x20   : > { %s1047_s28 = scalar_lea.vmem %s1381_s22, 128  ;;  %p1055_p5 = scmp.lt.s32.totalorder %s1381_s22, %s1381_s22 }
  0x21   : > { %p1048_p13 = scmp.ne.s32.totalorder %s1381_s22, %s1047_s28  ;;  %p1056_p4 = scmp.lt.s32.totalorder %s1047_s28, %s1047_s28 }
  0x23   : > { %p1050_p0 = pnand %p1048_p13, %p1408_p8  ;;  %p1057_p7 = por %p1056_p4, %p1055_p5 }
  0x25   : > { %p1051_p2 = pneg %p1050_p0 }
  0x27   : > { %p1058_p9 = pnand %p1057_p7, %p1051_p2 }
  0x29   : > { %1061 = shalt.err (!%p1058_p9)
}
  0x2a   : > { %s1287_s30 = smov 64   ;;  %s1288_s12 = smov 4  }
  0x2b   : > { %951 = dma.hbm_to_vmem [thread:$0]  (!%p1392_p6), %s1682_s1, 128, %s1381_s22, [#allocation6], %s1287_s30, %s1287_s30, %s1288_s12  }
  0x2c   : > { %s1062_s25 = scalar_lea.hbm %s1687_s6, 16 }
  0x2d   : > { %p1063_p4 = scmp.ne.s32.totalorder %s1687_s6, %s1062_s25  ;;  %p1069_p12 = scmp.lt.u32.totalorder %s1062_s25, %s1687_s6 }
  0x2f   : > { %p1065_p10 = pnand %p1063_p4, %p1408_p8 }
  0x31   : > { %p1066_p11 = pneg %p1065_p10 }
  0x33   : > { %p1071_p13 = pnand %p1069_p12, %p1066_p11 }
  0x35   : > { %1074 = shalt.err (!%p1071_p13)
}
  0x36   : > { %s1075_s22 = scalar_lea.vmem %s1396_s26, 16  ;;  %s1082_s10 = scalar_lea.vmem %s1396_s26, 32 }
  0x37   : > { %p1076_p0 = scmp.ne.s32.totalorder %s1396_s26, %s1075_s22  ;;  %p1083_p7 = scmp.lt.s32.totalorder %s1396_s26, %s1396_s26 }
  0x38   : > { %p1084_p9 = scmp.lt.s32.totalorder %s1082_s10, %s1075_s22 }
  0x39   : > { %p1078_p2 = pnand %p1076_p0, %p1408_p8 }
  0x3a   : > { %p1085_p4 = por %p1084_p9, %p1083_p7 }
  0x3b   : > { %p1079_p5 = pneg %p1078_p2 }
  0x3d   : > { %p1086_p10 = pnand %p1085_p4, %p1079_p5 }
  0x3f   : > { %1089 = shalt.err (!%p1086_p10)
}
  0x40   : > { %957 = dma.hbm_to_vmem [thread:$0]  (!%p1392_p6), %s1687_s6, 16, %s1396_s26, [#allocation9]  }
  0x41   : > { %s1090_s13 = scalar_lea.hbm %s1685_s4, 16 }
  0x42   : > { %p1091_p11 = scmp.ne.s32.totalorder %s1685_s4, %s1090_s13  ;;  %p1097_p0 = scmp.lt.u32.totalorder %s1090_s13, %s1685_s4 }
  0x44   : > { %p1093_p12 = pnand %p1091_p11, %p1408_p8 }
  0x46   : > { %p1094_p13 = pneg %p1093_p12 }
  0x48   : > { %p1099_p2 = pnand %p1097_p0, %p1094_p13 }
  0x4a   : > { %1102 = shalt.err (!%p1099_p2)
}
  0x4b   : > { %s1103_s26 = scalar_lea.vmem %s1398_s29, 16  ;;  %s1110_s28 = scalar_lea.vmem %s1398_s29, 32 }
  0x4c   : > { %p1104_p5 = scmp.ne.s32.totalorder %s1398_s29, %s1103_s26  ;;  %p1111_p4 = scmp.lt.s32.totalorder %s1398_s29, %s1398_s29 }
  0x4d   : > { %p1112_p10 = scmp.lt.s32.totalorder %s1110_s28, %s1103_s26 }
  0x4e   : > { %p1106_p7 = pnand %p1104_p5, %p1408_p8 }
  0x4f   : > { %p1113_p11 = por %p1112_p10, %p1111_p4 }
  0x50   : > { %p1107_p9 = pneg %p1106_p7 }
  0x52   : > { %p1114_p12 = pnand %p1113_p11, %p1107_p9 }
  0x54   : > { %1117 = shalt.err (!%p1114_p12)
}
  0x55   : > { %954 = dma.hbm_to_vmem [thread:$0]  (!%p1392_p6), %s1685_s4, 16, %s1398_s29, [#allocation6]  }
  0x56   : > { %s1289_s9 = smov [#allocation10]   ;;  %s1290_s30 = smov [#allocation11]  }
  0x57   : > { %s354_s11 = sshll.u32 %s1289_s9, 4  ;;  %s365_s12 = sshll.u32 %s1290_s30, 4  ;;  %s355_s11 = int_to_ptr.vmem [resolvable:$true] %s354_s11  ;;  %s366_s12 = int_to_ptr.vmem [resolvable:$true] %s365_s12 }
  0x58   : > { %s1118_s15 = scalar_lea.hbm %s1688_s7, 16 }
  0x59   : > { %p1119_p13 = scmp.ne.s32.totalorder %s1688_s7, %s1118_s15  ;;  %p1125_p5 = scmp.lt.u32.totalorder %s1118_s15, %s1688_s7 }
  0x5b   : > { %p1121_p0 = pnand %p1119_p13, %p1408_p8 }
  0x5d   : > { %p1122_p2 = pneg %p1121_p0 }
  0x5f   : > { %p1127_p7 = pnand %p1125_p5, %p1122_p2 }
  0x61   : > { %1130 = shalt.err (!%p1127_p7)
}
  0x62   : > { %s1131_s29 = scalar_lea.vmem %s355_s11, 16  ;;  %s1138_s22 = scalar_lea.vmem %s355_s11, 32 }
  0x63   : > { %p1132_p9 = scmp.ne.s32.totalorder %s355_s11, %s1131_s29  ;;  %p1139_p11 = scmp.lt.s32.totalorder %s355_s11, %s355_s11 }
  0x64   : > { %p1140_p12 = scmp.lt.s32.totalorder %s1138_s22, %s1131_s29 }
  0x65   : > { %p1134_p4 = pnand %p1132_p9, %p1408_p8 }
  0x66   : > { %p1141_p1 = por %p1140_p12, %p1139_p11 }
  0x67   : > { %p1135_p10 = pneg %p1134_p4 }
  0x69   : > { %p1142_p3 = pnand %p1141_p1, %p1135_p10 }
  0x6b   : > { %1145 = shalt.err (!%p1142_p3)
}
  0x6c   : > { %960 = dma.hbm_to_vmem [thread:$0]  (!%p1392_p6), %s1688_s7, 16, %s355_s11, [#allocation9]  }
  0x6d   : > { %s1146_s14 = scalar_lea.hbm %s1689_s8, 16 }
  0x6e   : > { %p1147_p13 = scmp.ne.s32.totalorder %s1689_s8, %s1146_s14  ;;  %p1153_p3 = scmp.lt.u32.totalorder %s1146_s14, %s1689_s8 }
  0x70   : > { %p1149_p0 = pnand %p1147_p13, %p1408_p8 }
  0x72   : > { %p1150_p1 = pneg %p1149_p0 }
  0x74   : > { %p1155_p2 = pnand %p1153_p3, %p1150_p1 }
  0x76   : > { %1158 = shalt.err (!%p1155_p2)
}
  0x77   : > { %s1159_s28 = scalar_lea.vmem %s366_s12, 16  ;;  %s1166_s11 = scalar_lea.vmem %s366_s12, 32 }
  0x78   : > { %p1160_p5 = scmp.ne.s32.totalorder %s366_s12, %s1159_s28  ;;  %p1167_p4 = scmp.lt.s32.totalorder %s366_s12, %s366_s12 }
  0x79   : > { %p1168_p10 = scmp.lt.s32.totalorder %s1166_s11, %s1159_s28 }
  0x7a   : > { %p1162_p7 = pnand %p1160_p5, %p1408_p8 }
  0x7b   : > { %p1169_p11 = por %p1168_p10, %p1167_p4 }
  0x7c   : > { %p1163_p9 = pneg %p1162_p7 }
  0x7e   : > { %p1170_p12 = pnand %p1169_p11, %p1163_p9 }
  0x80   : > { %1173 = shalt.err (!%p1170_p12)
}
  0x81   : > { %963 = dma.hbm_to_vmem [thread:$0]  (!%p1392_p6), %s1689_s8, 16, %s366_s12, [#allocation12]  }
  0x82   : > { %s857_s16 = sadd.s32 4294967294, %s1282_s20   ;;  %s1515_s27 = sadd.s32 1, %s1282_s20  }
  0x83   : > { %s37_s10 = sadd.s32 1, %s1278_s19  ;;  %s34_s9 = ssub.s32 %s1282_s20, %s1515_s27 }
  0x84   : > { %p44_p8 = scmp.ne.s32.totalorder %s1278_s19, %s1274_s18  ;;  %p35_p13 = scmp.eq.s32.totalorder %s34_s9, 0 }
  0x85   : > { %p45_p0 = scmp.eq.s32.totalorder %s1282_s20, 0  ;;  %p50_p1 = scmp.ne.s32.totalorder %s1274_s18, %s1270_s17 }
  0x86   : > { %p284_p3 = scmp.eq.s32.totalorder %s1376_s23, 1  ;;  %p1704_p5 = scmp.eq.s32.totalorder %s1376_s23, 0 }
  0x87   : > { %s1527_s30 = scalar_select %p35_p13, %s1278_s19, %s37_s10  }
  0x88   : > { %p46_p2 = por %p45_p0, %p44_p8  ;;  %p1531_p7 = por %p1704_p5, %p50_p1 }
  0x89   : > { %p1535_p6 = por %p284_p3, %p44_p8  ;;  %p290_p9 = scmp.eq.s32.totalorder %s857_s16, 1 }
  0x8a   : > { %p977_p4 = scmp.lt.s32.totalorder %s1282_s20, 2  ;;  %s382_s14 = sand.u32 1, %s1278_s19  }
  0x8b   : > { %s1706_s12 = scalar_select %p1535_p6, 1, 0 }
  0x8c   : > { %p1541_p10 = por %p290_p9, %p50_p1  ;;  %s865_s21 = sshll.u32 %s382_s14, 2 }
  0x8d   : > { %s866_s25 = sshll.u32 %s1282_s20, 6  ;;  %s386_s29 = scalar_lea.vmem [#allocation2], %s865_s21 }
  0x8e   : > { %s1707_s15 = scalar_select %p1541_p10, 1, 0 }
  0x8f   : > { %s1549_s11 = scalar_lea.hbm %s1681_s0, %s866_s25  ;;  %s393_s22 = sshll.u32 %s386_s29, 4  ;;  %s1555_s22 = int_to_ptr.vmem [resolvable:$true] %s393_s22 }
  0x90   : > { %p1551_p11 = pnand %p977_p4, %p46_p2  ;;  %s383_s10 = scalar_lea.sflag [#allocation3], %s382_s14 }
  0x91   : > { %s1174_s9 = scalar_lea.hbm %s1549_s11, 64  ;;  %s1179_s26 = scalar_lea.hbm %s1681_s0, 128 }
  0x92   : > { %p1175_p12 = scmp.ne.s32.totalorder %s1549_s11, %s1174_s9  ;;  %p1176_p8 = pneg %p1551_p11 }
  0x93   : > { %p1180_p1 = scmp.lt.u32.totalorder %s1549_s11, %s1681_s0  ;;  %p1181_p3 = scmp.lt.u32.totalorder %s1179_s26, %s1174_s9 }
  0x94   : > { %p1177_p13 = pnand %p1176_p8, %p1175_p12  ;;  %p1183_p5 = scmp.lt.u32.totalorder %s1174_s9, %s1549_s11 }
  0x95   : > { %p1182_p2 = por %p1181_p3, %p1180_p1 }
  0x96   : > { %p1178_p0 = pneg %p1177_p13 }
  0x97   : > { %p1184_p9 = por %p1183_p5, %p1182_p2 }
  0x99   : > { %p1185_p4 = pnand %p1184_p9, %p1178_p0 }
  0x9b   : > { %1188 = shalt.err (!%p1185_p4)
}
  0x9c   : > { %s1189_s14 = scalar_lea.vmem %s1555_s22, 64  ;;  %s1291_s25 = smov [#allocation2]  }
  0x9d   : > { %p1190_p12 = scmp.ne.s32.totalorder %s1555_s22, %s1189_s14  ;;  %s1194_s21 = sshll.u32 %s1291_s25, 4  ;;  %s1195_s21 = int_to_ptr.vmem [resolvable:$false] %s1194_s21 }
  0x9e   : > { %s1196_s28 = scalar_lea.vmem %s1195_s21, 128  ;;  %p1197_p6 = scmp.lt.s32.totalorder %s1555_s22, %s1195_s21 }
  0x9f   : > { %p1192_p13 = pnand %p1190_p12, %p1176_p8  ;;  %p1198_p1 = scmp.lt.s32.totalorder %s1196_s28, %s1189_s14 }
  0xa1   : > { %p1193_p10 = pneg %p1192_p13  ;;  %p1199_p3 = por %p1198_p1, %p1197_p6 }
  0xa3   : > { %p1200_p2 = pnand %p1199_p3, %p1193_p10 }
  0xa5   : > { %1203 = shalt.err (!%p1200_p2)
}
  0xa6   : > { %967 = dma.hbm_to_vmem [thread:$0]  (!%p1551_p11), %s1549_s11, 64, %s1555_s22, %s383_s10  }
  0xa7   : > { %p1709_p0 = scmp.ne.s32.totalorder %s1701_s24, 0 }
  0xa8   : > { %s1585_s9 = sand.u32 (!%p1709_p0), 1, %s1274_s18  }
  0xa9   : > { %402 = sbr.rel (%p1709_p0) target bundleno = 1482 (0x5ca), region = 64  ;;  %s868_s26 = sshll.u32 (!%p1709_p0), %s1585_s9, 2 }
  0xaa   : > { %s405_s29 = scalar_lea.sflag (!%p1709_p0), [#allocation3], %s1585_s9  ;;  %s408_s14 = scalar_lea.vmem (!%p1709_p0), [#allocation2], %s868_s26 }
  0xb0   : > { %1249 = dma.done.wait (%p1531_p7), %s405_s29, 64  }
  0xb1   : > { %1251 = vsyncadd (%p1531_p7), %s405_s29, 4294967232  ;;  %p1710_p6 = scmp.eq.s32.totalorder %s1376_s23, 0 }
  0xb3   : > { %1253 = dma.done.wait (%p1710_p6), [#allocation6], 144   ;;  %p1711_p10 = pmov %p1710_p6 }
  0xb4   : > { %p1712_p11 = pmov %p1710_p6 }
  0xb5   : > { %1255 = vsyncadd (%p1711_p10), [#allocation6], 4294967152 }
  0xb6   : > { %1257 = dma.done.wait (%p1712_p11), [#allocation9], 32   ;;  %p1713_p8 = pmov %p1710_p6 }
  0xb7   : > { %p1714_p5 = pmov %p1710_p6 }
  0xb8   : > { %1259 = vsyncadd (%p1713_p8), [#allocation9], 4294967264 }
  0xb9   : > { %1261 = dma.done.wait (%p1714_p5), [#allocation12], 16   ;;  %p1715_p9 = pmov %p1714_p5 }
  0xba   : > { %v1292_v0 = vmov 0.0   ;;  %vm1293_vm0 = vmmov 0   ;;  %v1025_v1 = vld [vmem:[#allocation5] sm:$0xff]   ;;  %v468_v2 = vld [vmem:[%s408_s14] sm:$0xf]  ;;  %vm484_vm1 = vcmask 130048  }
  0xbb   : > { %1263 = vsyncadd (%p1715_p9), [#allocation12], 4294967280  ;;  %902 = vmatprep.subr.bf16.mxu0 %v1292_v0  ;;  %904 = vmatprep.mubr.msk.bf16.mxu0 %vm1293_vm0, %v1292_v0  ;;  %v875_v3 = vld [vmem:[%s1683_s2] ss:$0 sm:$0xff]  ;;  %vm530_vm2 = vcmask 261120   ;;  %v1027_v16 = vld [vmem:[%s1686_s5 + $0x8] sm:$0xff]  }
  0xbc   : > { %908 = vmatprep.subr.bf16.mxu1 %v1292_v0  ;;  %912 = vmatprep.mubr.msk.bf16.mxu1 %vm1293_vm0, %v1292_v0  ;;  %v1026_v15 = vld [vmem:[%s1686_s5] sm:$0xff]   ;;  %v879_v23 = vld [vmem:[#allocation7] ss:$0 sm:$0xff]  ;;  %v880_v28 = vld [vmem:[#allocation8] ss:$0 sm:$0xff]  ;;  %s1716_s29 = sld [smem:[#allocation19_spill]] }
  0xbd   : > { %903 = vmatpush3.bf16.msra.mxu0 %v1025_v1  ;;  %909 = vmatpush3.bf16.msra.mxu1 %v1026_v15  ;;  %v878_v21 = vld [vmem:[%s1684_s3] ss:$0 sm:$0xff]  ;;  %v884_v46 = vld [vmem:[#allocation10] ss:$0 sm:$0xff]  ;;  %v885_v48 = vld [vmem:[#allocation11] ss:$0 sm:$0xff] }
  0xbe   : > { %916 = vmatprep.subr.bf16.mxu0 %v1292_v0  ;;  %910 = vmatprep.subr.bf16.mxu1 %v1292_v0  ;;  %s874_s13 = sshll.u32 %s1585_s9, 3  ;;  %s1717_s16 = sld [smem:[#allocation20_spill]] }
  0xbf   : > { %s891_s10 = sshll.u32 %s1376_s23, 7  ;;  %s466_s25 = scalar_lea.vmem [#allocation13], %s874_s13 }
  0xc0   : > { %905 = vmatmul.mubr.msk.bf16.vlgmr.msra.gmra.mrb[0].mxu0 %vm484_vm1, %v468_v2  ;;  %s739_s21 = sshll.u32 %s466_s25, 4  ;;  %s1718_s14 = sld [smem:[#allocation21_spill]]  ;;  %s1639_s21 = int_to_ptr.vmem [resolvable:$true] %s739_s21 }
  0xc1   : > { %920 = vmatprep.mubr.msk.bf16.mxu0 %vm1293_vm0, %v1292_v0  ;;  %911 = vmatpush3.bf16.msra.mxu1 %v1027_v16  ;;  %s726_s11 = scalar_lea.sflag [#allocation4], %s1585_s9  ;;  %s1204_s23 = scalar_lea.vmem %s1639_s21, 128 }
  0xc2   : > { %v1028_v40 = vld [vmem:[%s1716_s29] sm:$0xff]   ;;  %v1029_v41 = vld [vmem:[%s1716_s29 + $0x8] sm:$0xff]   ;;  %p1205_p7 = scmp.ne.s32.totalorder %s1639_s21, %s1204_s23  ;;  %p1719_p4 = scmp.ne.s32.totalorder %s1706_s12, 0 }
  0xc3   : > { %917 = vmatpush3.bf16.msra.mxu0 %v1028_v40  ;;  %s1294_s13 = smov [#allocation13]  }
  0xc4   : > { %918 = vmatprep.subr.bf16.mxu0 %v1292_v0  ;;  %v886_v53 = vld [vmem:[%s1717_s16] ss:$0 sm:$0xff]  ;;  %p1206_p12 = pnand %p1205_p7, %p1719_p4  ;;  %s1208_s22 = sshll.u32 %s1294_s13, 4  ;;  %s1209_s22 = int_to_ptr.vmem [resolvable:$false] %s1208_s22 }
  0xc5   : > { %s1210_s16 = scalar_lea.vmem %s1209_s22, 256  ;;  %p1211_p1 = scmp.lt.s32.totalorder %s1639_s21, %s1209_s22 }
  0xc6   : > { %s1637_s24 = scalar_lea.hbm %s1718_s14, %s891_s10  ;;  %p1207_p13 = pneg %p1206_p12 }
  0xc7   : > { %919 = vmatpush3.bf16.msra.mxu0 %v1029_v41  ;;  %p1212_p3 = scmp.lt.s32.totalorder %s1210_s16, %s1204_s23 }
  0xc9   : > { %p1213_p2 = por %p1212_p3, %p1211_p1 }
  0xcb   : > { %p1214_p0 = pnand %p1213_p2, %p1207_p13 }
 0x193   : > { %v522_v4 = vpop.f32.mrb[0].mxu0 }
 0x194   : > { %v523_v5 = vadd.f32 %v875_v3, %v522_v4  ;;  %v906_v6 = vpop.f32.mrb[1].mxu0 }
 0x195   : > { %v525_v7 = vpop.f32.mrb[2].mxu0 }
 0x196   : > { %v907_v8 = vpop.f32.mrb[3].mxu0  ;;  %v531_v9 = vsel %vm530_vm2, %v523_v5, 0.0 }
 0x197   : > { %532 = vadd.xlane.f32.xlu0 %v531_v9 }
 0x224   : > { %v533_v10 = vpop.xlane.xlu0 %532 }
 0x225   : > { %v535_v11 = vmul.f32 0.03125, %v533_v10 }
 0x227   : > { %v536_v12 = vsub.f32 %v523_v5, %v535_v11 }
 0x229   : > { %v537_v13 = vmul.f32 %v536_v12, %v536_v12 }
 0x22b   : > { %v538_v14 = vsel %vm530_vm2, %v537_v13, 0.0 }
 0x22c   : > { %539 = vadd.xlane.f32.xlu0 %v538_v14 }
 0x2b9   : > { %v540_v17 = vpop.xlane.xlu0 %539 }
 0x2ba   : > { %v541_v18 = vmul.f32 0.03125, %v540_v17 }
 0x2bc   : > { %v542_v19 = vadd.f32 1e-05, %v541_v18 }
 0x2be   : > { %1030 = vrsqrt.f32 %v542_v19 }
 0x2c8   : > { %v1031_v20 = vpop.eup %1030 }
 0x2c9   : > { %v544_v22 = vmul.f32 %v1031_v20, %v536_v12 }
 0x2cb   : > { %v551_v24 = vmul.f32 %v878_v21, %v544_v22 }
 0x2cd   : > { %v558_v25 = vadd.f32 %v879_v23, %v551_v24 }
 0x2cf   : > { %v559_v26 = vmax.f32 %v558_v25, 0.0 }
 0x2d1   : > { %v560_v27 = vpack.c.bf16 %v559_v26, %v559_v26 }
 0x2d3   : > { %913 = vmatmul.mubr.msk.bf16.vlgmr.msra.gmra.mrb[0].mxu1 %vm530_vm2, %v560_v27 }
 0x3a6   : > { %v621_v29 = vpop.f32.mrb[0].mxu1 }
 0x3a7   : > { %v622_v30 = vadd.f32 %v880_v28, %v621_v29  ;;  %v914_v31 = vpop.f32.mrb[1].mxu1 }
 0x3a8   : > { %v624_v32 = vpop.f32.mrb[2].mxu1 }
 0x3a9   : > { %v915_v33 = vpop.f32.mrb[3].mxu1  ;;  %v629_v34 = vsel %vm530_vm2, %v622_v30, 0.0 }
 0x3aa   : > { %630 = vadd.xlane.f32.xlu1 %v629_v34 }
 0x437   : > { %v631_v35 = vpop.xlane.xlu1 %630 }
 0x438   : > { %v632_v36 = vmul.f32 0.03125, %v631_v35 }
 0x43a   : > { %v633_v37 = vsub.f32 %v622_v30, %v632_v36 }
 0x43c   : > { %v634_v38 = vmul.f32 %v633_v37, %v633_v37 }
 0x43e   : > { %v635_v39 = vsel %vm530_vm2, %v634_v38, 0.0 }
 0x43f   : > { %636 = vadd.xlane.f32.xlu1 %v635_v39 }
 0x4cc   : > { %v637_v42 = vpop.xlane.xlu1 %636 }
 0x4cd   : > { %v638_v43 = vmul.f32 0.03125, %v637_v42 }
 0x4cf   : > { %v639_v44 = vadd.f32 1e-05, %v638_v43 }
 0x4d1   : > { %1032 = vrsqrt.f32 %v639_v44 }
 0x4db   : > { %v1033_v45 = vpop.eup %1032 }
 0x4dc   : > { %v641_v47 = vmul.f32 %v1033_v45, %v633_v37 }
 0x4de   : > { %v648_v49 = vmul.f32 %v884_v46, %v641_v47 }
 0x4e0   : > { %v655_v50 = vadd.f32 %v885_v48, %v648_v49 }
 0x4e2   : > { %v656_v51 = vmax.f32 %v655_v50, 0.0 }
 0x4e4   : > { %v657_v52 = vpack.c.bf16 %v656_v51, %v656_v51 }
 0x4e6   : > { %921 = vmatmul.mubr.msk.bf16.vlgmr.msra.gmra.mrb[4].mxu0 %vm530_vm2, %v657_v52 }
 0x5b9   : > { %v718_v54 = vpop.f32.mrb[4].mxu0 }
 0x5ba   : > { %v719_v55 = vadd.f32 %v886_v53, %v718_v54  ;;  %v922_v56 = vpop.f32.mrb[5].mxu0 }
 0x5bb   : > { %v721_v57 = vpop.f32.mrb[6].mxu0 }
 0x5bc   : > { %724 = vst [vmem:[%s466_s25] sm:$0xff] %v719_v55  ;;  %v923_v58 = vpop.f32.mrb[7].mxu0 }
 0x5bd   : > { %1217 = shalt.err (!%p1214_p0)
}
 0x5be   : > { %s1218_s9 = scalar_lea.hbm %s1637_s24, 128  ;;  %s1222_s28 = scalar_lea.hbm %s1718_s14, 256 }
 0x5bf   : > { %p1219_p6 = scmp.ne.s32.totalorder %s1637_s24, %s1218_s9  ;;  %p1223_p8 = scmp.lt.u32.totalorder %s1637_s24, %s1718_s14 }
 0x5c0   : > { %p1224_p5 = scmp.lt.u32.totalorder %s1222_s28, %s1218_s9  ;;  %p1226_p7 = scmp.lt.u32.totalorder %s1218_s9, %s1637_s24 }
 0x5c1   : > { %p1220_p10 = pnand %p1219_p6, %p1719_p4 }
 0x5c2   : > { %p1225_p9 = por %p1224_p5, %p1223_p8 }
 0x5c3   : > { %p1221_p11 = pneg %p1220_p10 }
 0x5c4   : > { %p1227_p12 = por %p1226_p7, %p1225_p9 }
 0x5c6   : > { %p1228_p13 = pnand %p1227_p12, %p1221_p11 }
 0x5c8   : > { %1231 = shalt.err (!%p1228_p13)
}
 0x5c9   : > { %946 = dma.vmem_to_hbm [thread:$0]  (%p1719_p4), %s1639_s21, 128, %s1637_s24, %s726_s11  }
 0x5ca PF: > { %s751_s23 = sand.u32 1, %s1270_s17   ;;  %p1720_p1 = scmp.ne.s32.totalorder %s1707_s15, 0 }
 0x5cb   : > { %p1721_p3 = scmp.ge.s32.totalorder %s1282_s20, 2  ;;  %s752_s22 = scalar_lea.sflag [#allocation4], %s751_s23 }
 0x5cd   : > { %p969_p2 = pnand %p1721_p3, %p1720_p1 }
 0x5cf   : > { %1265 = dma.done.wait (!%p969_p2), %s752_s22, 128  }
 0x5d0   : > { %1267 = vsyncadd (!%p969_p2), %s752_s22, 4294967168  ;;  %p27_p0 = scmp.ge.s32.totalorder %s1515_s27, 4   ;;  %s1722_s17 = smov %s1274_s18 }
 0x5d1   : > { %s1723_s18 = smov %s1278_s19  ;;  %s1724_s19 = smov %s1527_s30 }
 0x5d2   : > { %s1725_s20 = smov %s1515_s27  ;;  %29 = sbr.rel (!%p27_p0) target bundleno = 12 (0xc), region = 129 }
 0x5d9   :  { %757 = vsyncpa [#allocation3], 1 }
 0x5da   :  { %759 = vsyncpa [#allocation3 + $0x1], 1 }
 0x5db   :  { %760 = vsyncpa [#allocation6], 1 }
 0x5dc   :  { %761 = vsyncpa [#allocation9], 1 }
 0x5dd   :  { %762 = vsyncpa [#allocation12], 1 }
 0x5de   :  { %763 = vsyncpa [#allocation4], 1 }
 0x5df   :  { %765 = vsyncpa [#allocation4 + $0x1], 1 }

// kernel: tpu_custom_call.1
= control target key start
LH: loop header
LB: loop body
LE: loop exit
PB: predicated region body
PF: predicated region fallthrough
CT: control target
= control target key end

     0   :  { %s1681_s0 = inlined_call_operand.hbm [shape: bf16[16,16], index: 0, kind: input, shape index: {}]   ;;  %s1682_s1 = inlined_call_operand.hbm [shape: bf16[16,32], index: 1, kind: input, shape index: {}]   ;;  %s1683_s2 = inlined_call_operand.vmem [shape: f32[1,32], index: 2, kind: input, shape index: {}]   ;;  %s1684_s3 = inlined_call_operand.vmem [shape: f32[1,32], index: 3, kind: input, shape index: {}]   ;;  %s1685_s4 = inlined_call_operand.hbm [shape: f32[1,32], index: 4, kind: input, shape index: {}]   ;;  %s1686_s5 = inlined_call_operand.vmem [shape: bf16[32,32], index: 5, kind: input, shape index: {}]   ;;  %s1687_s6 = inlined_call_operand.hbm [shape: f32[1,32], index: 6, kind: input, shape index: {}]   ;;  %s1688_s7 = inlined_call_operand.hbm [shape: f32[1,32], index: 7, kind: input, shape index: {}]   ;;  %s1689_s8 = inlined_call_operand.hbm [shape: f32[1,32], index: 8, kind: input, shape index: {}]   ;;  %s1690_s9 = inlined_call_operand.vmem [shape: bf16[32,128], index: 9, kind: input, shape index: {}]   ;;  %s1691_s10 = inlined_call_operand.vmem [shape: f32[1,128], index: 10, kind: input, shape index: {}]   ;;  %s1692_s11 = inlined_call_operand.hbm [shape: f32[16,128], index: 11, kind: output, shape index: {}]  }
   0x1   :  { %1698 = sst [smem:[#allocation19_spill]] %s1690_s9 }
   0x2   :  { %1699 = sst [smem:[#allocation20_spill]] %s1691_s10 }
   0x3   :  { %1700 = sst [smem:[#allocation21_spill]] %s1692_s11 }
   0x4   :  { %16 = vsyncpa [#allocation3], 0 }
   0x5   :  { %18 = vsyncpa [#allocation3 + $0x1], 0 }
   0x6   :  { %19 = vsyncpa [#allocation6], 0 }
   0x7   :  { %20 = vsyncpa [#allocation9], 0 }
   0x8   :  { %21 = vsyncpa [#allocation12], 0 }
   0x9   :  { %22 = vsyncpa [#allocation4], 0 }
   0xa   :  { %24 = vsyncpa [#allocation4 + $0x1], 0  ;;  %s1355_s17 = smov 0   ;;  %s1357_s18 = smov 0  }
   0xb   :  { %s1359_s19 = smov 0   ;;  %s1361_s20 = smov 0  }
   0xc LB: > { %s1284_s21 = smov [#allocation5]   ;;  %s1376_s23 = sadd.s32 4294967295, %s1282_s20   ;;  %s1282_s20 = sphi %s1361_s20, %s1725_s20   ;;  %s1278_s19 = sphi %s1359_s19, %s1724_s19   ;;  %s1274_s18 = sphi %s1357_s18, %s1723_s18   ;;  %s1270_s17 = sphi %s1355_s17, %s1722_s17  }
   0xd   : > { %s309_s22 = sshll.u32 %s1284_s21, 4  ;;  %p858_p0 = scmp.ge.s32.totalorder %s1282_s20, 1  ;;  %s1381_s22 = int_to_ptr.vmem [resolvable:$true] %s309_s22 }
   0xe   : > { %p1695_p1 = scmp.eq.s32.totalorder %s1376_s23, 0  ;;  %p297_p2 = scmp.lt.s32.totalorder %s1282_s20, 3 }
   0xf   : > { %s1285_s25 = smov [#allocation8]   ;;  %s1286_s28 = smov [#allocation7]  }
  0x10   : > { %p1383_p3 = pnand %p858_p0, %p297_p2  ;;  %s343_s26 = sshll.u32 %s1285_s25, 4  ;;  %s1396_s26 = int_to_ptr.vmem [resolvable:$true] %s343_s26 }
  0x11   : > { %s329_s29 = sshll.u32 %s1286_s28, 4  ;;  %s1034_s13 = scalar_lea.hbm %s1682_s1, 128  ;;  %s1398_s29 = int_to_ptr.vmem [resolvable:$true] %s329_s29 }
  0x12   : > { %s1701_s24 = scalar_select %p1383_p3, 1, 0 }
  0x13   : > { %p948_p5 = pneg %p1383_p3  ;;  %p1035_p7 = scmp.ne.s32.totalorder %s1682_s1, %s1034_s13 }
  0x14   : > { %p1041_p11 = scmp.lt.u32.totalorder %s1034_s13, %s1682_s1 }
  0x15   : > { %p1392_p6 = pnand %p948_p5, %p1695_p1 }
  0x17   : > { %p1408_p8 = pneg %p1392_p6 }
  0x19   : > { %p1037_p9 = pnand %p1408_p8, %p1035_p7 }
  0x1b   : > { %p1038_p10 = pneg %p1037_p9 }
  0x1d   : > { %p1043_p12 = pnand %p1041_p11, %p1038_p10 }
  0x1f   : > { %1046 = shalt.err (!%p1043_p12)
}
  0x20   : > { %s1047_s28 = scalar_lea.vmem %s1381_s22, 128  ;;  %p1055_p5 = scmp.lt.s32.totalorder %s1381_s22, %s1381_s22 }
  0x21   : > { %p1048_p13 = scmp.ne.s32.totalorder %s1381_s22, %s1047_s28  ;;  %p1056_p4 = scmp.lt.s32.totalorder %s1047_s28, %s1047_s28 }
  0x23   : > { %p1050_p0 = pnand %p1048_p13, %p1408_p8  ;;  %p1057_p7 = por %p1056_p4, %p1055_p5 }
  0x25   : > { %p1051_p2 = pneg %p1050_p0 }
  0x27   : > { %p1058_p9 = pnand %p1057_p7, %p1051_p2 }
  0x29   : > { %1061 = shalt.err (!%p1058_p9)
}
  0x2a   : > { %s1287_s30 = smov 64   ;;  %s1288_s12 = smov 4  }
  0x2b   : > { %951 = dma.hbm_to_vmem [thread:$0]  (!%p1392_p6), %s1682_s1, 128, %s1381_s22, [#allocation6], %s1287_s30, %s1287_s30, %s1288_s12  }
  0x2c   : > { %s1062_s25 = scalar_lea.hbm %s1687_s6, 16 }
  0x2d   : > { %p1063_p4 = scmp.ne.s32.totalorder %s1687_s6, %s1062_s25  ;;  %p1069_p12 = scmp.lt.u32.totalorder %s1062_s25, %s1687_s6 }
  0x2f   : > { %p1065_p10 = pnand %p1063_p4, %p1408_p8 }
  0x31   : > { %p1066_p11 = pneg %p1065_p10 }
  0x33   : > { %p1071_p13 = pnand %p1069_p12, %p1066_p11 }
  0x35   : > { %1074 = shalt.err (!%p1071_p13)
}
  0x36   : > { %s1075_s22 = scalar_lea.vmem %s1396_s26, 16  ;;  %s1082_s10 = scalar_lea.vmem %s1396_s26, 32 }
  0x37   : > { %p1076_p0 = scmp.ne.s32.totalorder %s1396_s26, %s1075_s22  ;;  %p1083_p7 = scmp.lt.s32.totalorder %s1396_s26, %s1396_s26 }
  0x38   : > { %p1084_p9 = scmp.lt.s32.totalorder %s1082_s10, %s1075_s22 }
  0x39   : > { %p1078_p2 = pnand %p1076_p0, %p1408_p8 }
  0x3a   : > { %p1085_p4 = por %p1084_p9, %p1083_p7 }
  0x3b   : > { %p1079_p5 = pneg %p1078_p2 }
  0x3d   : > { %p1086_p10 = pnand %p1085_p4, %p1079_p5 }
  0x3f   : > { %1089 = shalt.err (!%p1086_p10)
}
  0x40   : > { %957 = dma.hbm_to_vmem [thread:$0]  (!%p1392_p6), %s1687_s6, 16, %s1396_s26, [#allocation9]  }
  0x41   : > { %s1090_s13 = scalar_lea.hbm %s1685_s4, 16 }
  0x42   : > { %p1091_p11 = scmp.ne.s32.totalorder %s1685_s4, %s1090_s13  ;;  %p1097_p0 = scmp.lt.u32.totalorder %s1090_s13, %s1685_s4 }
  0x44   : > { %p1093_p12 = pnand %p1091_p11, %p1408_p8 }
  0x46   : > { %p1094_p13 = pneg %p1093_p12 }
  0x48   : > { %p1099_p2 = pnand %p1097_p0, %p1094_p13 }
  0x4a   : > { %1102 = shalt.err (!%p1099_p2)
}
  0x4b   : > { %s1103_s26 = scalar_lea.vmem %s1398_s29, 16  ;;  %s1110_s28 = scalar_lea.vmem %s1398_s29, 32 }
  0x4c   : > { %p1104_p5 = scmp.ne.s32.totalorder %s1398_s29, %s1103_s26  ;;  %p1111_p4 = scmp.lt.s32.totalorder %s1398_s29, %s1398_s29 }
  0x4d   : > { %p1112_p10 = scmp.lt.s32.totalorder %s1110_s28, %s1103_s26 }
  0x4e   : > { %p1106_p7 = pnand %p1104_p5, %p1408_p8 }
  0x4f   : > { %p1113_p11 = por %p1112_p10, %p1111_p4 }
  0x50   : > { %p1107_p9 = pneg %p1106_p7 }
  0x52   : > { %p1114_p12 = pnand %p1113_p11, %p1107_p9 }
  0x54   : > { %1117 = shalt.err (!%p1114_p12)
}
  0x55   : > { %954 = dma.hbm_to_vmem [thread:$0]  (!%p1392_p6), %s1685_s4, 16, %s1398_s29, [#allocation6]  }
  0x56   : > { %s1289_s9 = smov [#allocation10]   ;;  %s1290_s30 = smov [#allocation11]  }
  0x57   : > { %s354_s11 = sshll.u32 %s1289_s9, 4  ;;  %s365_s12 = sshll.u32 %s1290_s30, 4  ;;  %s355_s11 = int_to_ptr.vmem [resolvable:$true] %s354_s11  ;;  %s366_s12 = int_to_ptr.vmem [resolvable:$true] %s365_s12 }
  0x58   : > { %s1118_s15 = scalar_lea.hbm %s1688_s7, 16 }
  0x59   : > { %p1119_p13 = scmp.ne.s32.totalorder %s1688_s7, %s1118_s15  ;;  %p1125_p5 = scmp.lt.u32.totalorder %s1118_s15, %s1688_s7 }
  0x5b   : > { %p1121_p0 = pnand %p1119_p13, %p1408_p8 }
  0x5d   : > { %p1122_p2 = pneg %p1121_p0 }
  0x5f   : > { %p1127_p7 = pnand %p1125_p5, %p1122_p2 }
  0x61   : > { %1130 = shalt.err (!%p1127_p7)
}
  0x62   : > { %s1131_s29 = scalar_lea.vmem %s355_s11, 16  ;;  %s1138_s22 = scalar_lea.vmem %s355_s11, 32 }
  0x63   : > { %p1132_p9 = scmp.ne.s32.totalorder %s355_s11, %s1131_s29  ;;  %p1139_p11 = scmp.lt.s32.totalorder %s355_s11, %s355_s11 }
  0x64   : > { %p1140_p12 = scmp.lt.s32.totalorder %s1138_s22, %s1131_s29 }
  0x65   : > { %p1134_p4 = pnand %p1132_p9, %p1408_p8 }
  0x66   : > { %p1141_p1 = por %p1140_p12, %p1139_p11 }
  0x67   : > { %p1135_p10 = pneg %p1134_p4 }
  0x69   : > { %p1142_p3 = pnand %p1141_p1, %p1135_p10 }
  0x6b   : > { %1145 = shalt.err (!%p1142_p3)
}
  0x6c   : > { %960 = dma.hbm_to_vmem [thread:$0]  (!%p1392_p6), %s1688_s7, 16, %s355_s11, [#allocation9]  }
  0x6d   : > { %s1146_s14 = scalar_lea.hbm %s1689_s8, 16 }
  0x6e   : > { %p1147_p13 = scmp.ne.s32.totalorder %s1689_s8, %s1146_s14  ;;  %p1153_p3 = scmp.lt.u32.totalorder %s1146_s14, %s1689_s8 }
  0x70   : > { %p1149_p0 = pnand %p1147_p13, %p1408_p8 }
  0x72   : > { %p1150_p1 = pneg %p1149_p0 }
  0x74   : > { %p1155_p2 = pnand %p1153_p3, %p1150_p1 }
  0x76   : > { %1158 = shalt.err (!%p1155_p2)
}
  0x77   : > { %s1159_s28 = scalar_lea.vmem %s366_s12, 16  ;;  %s1166_s11 = scalar_lea.vmem %s366_s12, 32 }
  0x78   : > { %p1160_p5 = scmp.ne.s32.totalorder %s366_s12, %s1159_s28  ;;  %p1167_p4 = scmp.lt.s32.totalorder %s366_s12, %s366_s12 }
  0x79   : > { %p1168_p10 = scmp.lt.s32.totalorder %s1166_s11, %s1159_s28 }
  0x7a   : > { %p1162_p7 = pnand %p1160_p5, %p1408_p8 }
  0x7b   : > { %p1169_p11 = por %p1168_p10, %p1167_p4 }
  0x7c   : > { %p1163_p9 = pneg %p1162_p7 }
  0x7e   : > { %p1170_p12 = pnand %p1169_p11, %p1163_p9 }
  0x80   : > { %1173 = shalt.err (!%p1170_p12)
}
  0x81   : > { %963 = dma.hbm_to_vmem [thread:$0]  (!%p1392_p6), %s1689_s8, 16, %s366_s12, [#allocation12]  }
  0x82   : > { %s857_s16 = sadd.s32 4294967294, %s1282_s20   ;;  %s1515_s27 = sadd.s32 1, %s1282_s20  }
  0x83   : > { %s37_s10 = sadd.s32 1, %s1278_s19  ;;  %s34_s9 = ssub.s32 %s1282_s20, %s1515_s27 }
  0x84   : > { %p44_p8 = scmp.ne.s32.totalorder %s1278_s19, %s1274_s18  ;;  %p35_p13 = scmp.eq.s32.totalorder %s34_s9, 0 }
  0x85   : > { %p45_p0 = scmp.eq.s32.totalorder %s1282_s20, 0  ;;  %p50_p1 = scmp.ne.s32.totalorder %s1274_s18, %s1270_s17 }
  0x86   : > { %p284_p3 = scmp.eq.s32.totalorder %s1376_s23, 1  ;;  %p1704_p5 = scmp.eq.s32.totalorder %s1376_s23, 0 }
  0x87   : > { %s1527_s30 = scalar_select %p35_p13, %s1278_s19, %s37_s10  }
  0x88   : > { %p46_p2 = por %p45_p0, %p44_p8  ;;  %p1531_p7 = por %p1704_p5, %p50_p1 }
  0x89   : > { %p1535_p6 = por %p284_p3, %p44_p8  ;;  %p290_p9 = scmp.eq.s32.totalorder %s857_s16, 1 }
  0x8a   : > { %p977_p4 = scmp.lt.s32.totalorder %s1282_s20, 2  ;;  %s382_s14 = sand.u32 1, %s1278_s19  }
  0x8b   : > { %s1706_s12 = scalar_select %p1535_p6, 1, 0 }
  0x8c   : > { %p1541_p10 = por %p290_p9, %p50_p1  ;;  %s865_s21 = sshll.u32 %s382_s14, 2 }
  0x8d   : > { %s866_s25 = sshll.u32 %s1282_s20, 6  ;;  %s386_s29 = scalar_lea.vmem [#allocation2], %s865_s21 }
  0x8e   : > { %s1707_s15 = scalar_select %p1541_p10, 1, 0 }
  0x8f   : > { %s1549_s11 = scalar_lea.hbm %s1681_s0, %s866_s25  ;;  %s393_s22 = sshll.u32 %s386_s29, 4  ;;  %s1555_s22 = int_to_ptr.vmem [resolvable:$true] %s393_s22 }
  0x90   : > { %p1551_p11 = pnand %p977_p4, %p46_p2  ;;  %s383_s10 = scalar_lea.sflag [#allocation3], %s382_s14 }
  0x91   : > { %s1174_s9 = scalar_lea.hbm %s1549_s11, 64  ;;  %s1179_s26 = scalar_lea.hbm %s1681_s0, 128 }
  0x92   : > { %p1175_p12 = scmp.ne.s32.totalorder %s1549_s11, %s1174_s9  ;;  %p1176_p8 = pneg %p1551_p11 }
  0x93   : > { %p1180_p1 = scmp.lt.u32.totalorder %s1549_s11, %s1681_s0  ;;  %p1181_p3 = scmp.lt.u32.totalorder %s1179_s26, %s1174_s9 }
  0x94   : > { %p1177_p13 = pnand %p1176_p8, %p1175_p12  ;;  %p1183_p5 = scmp.lt.u32.totalorder %s1174_s9, %s1549_s11 }
  0x95   : > { %p1182_p2 = por %p1181_p3, %p1180_p1 }
  0x96   : > { %p1178_p0 = pneg %p1177_p13 }
  0x97   : > { %p1184_p9 = por %p1183_p5, %p1182_p2 }
  0x99   : > { %p1185_p4 = pnand %p1184_p9, %p1178_p0 }
  0x9b   : > { %1188 = shalt.err (!%p1185_p4)
}
  0x9c   : > { %s1189_s14 = scalar_lea.vmem %s1555_s22, 64  ;;  %s1291_s25 = smov [#allocation2]  }
  0x9d   : > { %p1190_p12 = scmp.ne.s32.totalorder %s1555_s22, %s1189_s14  ;;  %s1194_s21 = sshll.u32 %s1291_s25, 4  ;;  %s1195_s21 = int_to_ptr.vmem [resolvable:$false] %s1194_s21 }
  0x9e   : > { %s1196_s28 = scalar_lea.vmem %s1195_s21, 128  ;;  %p1197_p6 = scmp.lt.s32.totalorder %s1555_s22, %s1195_s21 }
  0x9f   : > { %p1192_p13 = pnand %p1190_p12, %p1176_p8  ;;  %p1198_p1 = scmp.lt.s32.totalorder %s1196_s28, %s1189_s14 }
  0xa1   : > { %p1193_p10 = pneg %p1192_p13  ;;  %p1199_p3 = por %p1198_p1, %p1197_p6 }
  0xa3   : > { %p1200_p2 = pnand %p1199_p3, %p1193_p10 }
  0xa5   : > { %1203 = shalt.err (!%p1200_p2)
}
  0xa6   : > { %967 = dma.hbm_to_vmem [thread:$0]  (!%p1551_p11), %s1549_s11, 64, %s1555_s22, %s383_s10  }
  0xa7   : > { %p1709_p0 = scmp.ne.s32.totalorder %s1701_s24, 0 }
  0xa8   : > { %s1585_s9 = sand.u32 (!%p1709_p0), 1, %s1274_s18  }
  0xa9   : > { %402 = sbr.rel (%p1709_p0) target bundleno = 1482 (0x5ca), region = 64  ;;  %s868_s26 = sshll.u32 (!%p1709_p0), %s1585_s9, 2 }
  0xaa   : > { %s405_s29 = scalar_lea.sflag (!%p1709_p0), [#allocation3], %s1585_s9  ;;  %s408_s14 = scalar_lea.vmem (!%p1709_p0), [#allocation2], %s868_s26 }
  0xb0   : > { %1249 = dma.done.wait (%p1531_p7), %s405_s29, 64  }
  0xb1   : > { %1251 = vsyncadd (%p1531_p7), %s405_s29, 4294967232  ;;  %p1710_p6 = scmp.eq.s32.totalorder %s1376_s23, 0 }
  0xb3   : > { %1253 = dma.done.wait (%p1710_p6), [#allocation6], 144   ;;  %p1711_p10 = pmov %p1710_p6 }
  0xb4   : > { %p1712_p11 = pmov %p1710_p6 }
  0xb5   : > { %1255 = vsyncadd (%p1711_p10), [#allocation6], 4294967152 }
  0xb6   : > { %1257 = dma.done.wait (%p1712_p11), [#allocation9], 32   ;;  %p1713_p8 = pmov %p1710_p6 }
  0xb7   : > { %p1714_p5 = pmov %p1710_p6 }
  0xb8   : > { %1259 = vsyncadd (%p1713_p8), [#allocation9], 4294967264 }
  0xb9   : > { %1261 = dma.done.wait (%p1714_p5), [#allocation12], 16   ;;  %p1715_p9 = pmov %p1714_p5 }
  0xba   : > { %v1292_v0 = vmov 0.0   ;;  %vm1293_vm0 = vmmov 0   ;;  %v1025_v1 = vld [vmem:[#allocation5] sm:$0xff]   ;;  %v468_v2 = vld [vmem:[%s408_s14] sm:$0xf]  ;;  %vm484_vm1 = vcmask 130048  }
  0xbb   : > { %1263 = vsyncadd (%p1715_p9), [#allocation12], 4294967280  ;;  %902 = vmatprep.subr.bf16.mxu0 %v1292_v0  ;;  %904 = vmatprep.mubr.msk.bf16.mxu0 %vm1293_vm0, %v1292_v0  ;;  %v875_v3 = vld [vmem:[%s1683_s2] ss:$0 sm:$0xff]  ;;  %vm530_vm2 = vcmask 261120   ;;  %v1027_v16 = vld [vmem:[%s1686_s5 + $0x8] sm:$0xff]  }
  0xbc   : > { %908 = vmatprep.subr.bf16.mxu1 %v1292_v0  ;;  %912 = vmatprep.mubr.msk.bf16.mxu1 %vm1293_vm0, %v1292_v0  ;;  %v1026_v15 = vld [vmem:[%s1686_s5] sm:$0xff]   ;;  %v879_v23 = vld [vmem:[#allocation7] ss:$0 sm:$0xff]  ;;  %v880_v28 = vld [vmem:[#allocation8] ss:$0 sm:$0xff]  ;;  %s1716_s29 = sld [smem:[#allocation19_spill]] }
  0xbd   : > { %903 = vmatpush3.bf16.msra.mxu0 %v1025_v1  ;;  %909 = vmatpush3.bf16.msra.mxu1 %v1026_v15  ;;  %v878_v21 = vld [vmem:[%s1684_s3] ss:$0 sm:$0xff]  ;;  %v884_v46 = vld [vmem:[#allocation10] ss:$0 sm:$0xff]  ;;  %v885_v48 = vld [vmem:[#allocation11] ss:$0 sm:$0xff] }
  0xbe   : > { %916 = vmatprep.subr.bf16.mxu0 %v1292_v0  ;;  %910 = vmatprep.subr.bf16.mxu1 %v1292_v0  ;;  %s874_s13 = sshll.u32 %s1585_s9, 3  ;;  %s1717_s16 = sld [smem:[#allocation20_spill]] }
  0xbf   : > { %s891_s10 = sshll.u32 %s1376_s23, 7  ;;  %s466_s25 = scalar_lea.vmem [#allocation13], %s874_s13 }
  0xc0   : > { %905 = vmatmul.mubr.msk.bf16.vlgmr.msra.gmra.mrb[0].mxu0 %vm484_vm1, %v468_v2  ;;  %s739_s21 = sshll.u32 %s466_s25, 4  ;;  %s1718_s14 = sld [smem:[#allocation21_spill]]  ;;  %s1639_s21 = int_to_ptr.vmem [resolvable:$true] %s739_s21 }
  0xc1   : > { %920 = vmatprep.mubr.msk.bf16.mxu0 %vm1293_vm0, %v1292_v0  ;;  %911 = vmatpush3.bf16.msra.mxu1 %v1027_v16  ;;  %s726_s11 = scalar_lea.sflag [#allocation4], %s1585_s9  ;;  %s1204_s23 = scalar_lea.vmem %s1639_s21, 128 }
  0xc2   : > { %v1028_v40 = vld [vmem:[%s1716_s29] sm:$0xff]   ;;  %v1029_v41 = vld [vmem:[%s1716_s29 + $0x8] sm:$0xff]   ;;  %p1205_p7 = scmp.ne.s32.totalorder %s1639_s21, %s1204_s23  ;;  %p1719_p4 = scmp.ne.s32.totalorder %s1706_s12, 0 }
  0xc3   : > { %917 = vmatpush3.bf16.msra.mxu0 %v1028_v40  ;;  %s1294_s13 = smov [#allocation13]  }
  0xc4   : > { %918 = vmatprep.subr.bf16.mxu0 %v1292_v0  ;;  %v886_v53 = vld [vmem:[%s1717_s16] ss:$0 sm:$0xff]  ;;  %p1206_p12 = pnand %p1205_p7, %p1719_p4  ;;  %s1208_s22 = sshll.u32 %s1294_s13, 4  ;;  %s1209_s22 = int_to_ptr.vmem [resolvable:$false] %s1208_s22 }
  0xc5   : > { %s1210_s16 = scalar_lea.vmem %s1209_s22, 256  ;;  %p1211_p1 = scmp.lt.s32.totalorder %s1639_s21, %s1209_s22 }
  0xc6   : > { %s1637_s24 = scalar_lea.hbm %s1718_s14, %s891_s10  ;;  %p1207_p13 = pneg %p1206_p12 }
  0xc7   : > { %919 = vmatpush3.bf16.msra.mxu0 %v1029_v41  ;;  %p1212_p3 = scmp.lt.s32.totalorder %s1210_s16, %s1204_s23 }
  0xc9   : > { %p1213_p2 = por %p1212_p3, %p1211_p1 }
  0xcb   : > { %p1214_p0 = pnand %p1213_p2, %p1207_p13 }
 0x193   : > { %v522_v4 = vpop.f32.mrb[0].mxu0 }
 0x194   : > { %v523_v5 = vadd.f32 %v875_v3, %v522_v4  ;;  %v906_v6 = vpop.f32.mrb[1].mxu0 }
 0x195   : > { %v525_v7 = vpop.f32.mrb[2].mxu0 }
 0x196   : > { %v907_v8 = vpop.f32.mrb[3].mxu0  ;;  %v531_v9 = vsel %vm530_vm2, %v523_v5, 0.0 }
 0x197   : > { %532 = vadd.xlane.f32.xlu0 %v531_v9 }
 0x224   : > { %v533_v10 = vpop.xlane.xlu0 %532 }
 0x225   : > { %v535_v11 = vmul.f32 0.03125, %v533_v10 }
 0x227   : > { %v536_v12 = vsub.f32 %v523_v5, %v535_v11 }
 0x229   : > { %v537_v13 = vmul.f32 %v536_v12, %v536_v12 }
 0x22b   : > { %v538_v14 = vsel %vm530_vm2, %v537_v13, 0.0 }
 0x22c   : > { %539 = vadd.xlane.f32.xlu0 %v538_v14 }
 0x2b9   : > { %v540_v17 = vpop.xlane.xlu0 %539 }
 0x2ba   : > { %v541_v18 = vmul.f32 0.03125, %v540_v17 }
 0x2bc   : > { %v542_v19 = vadd.f32 1e-05, %v541_v18 }
 0x2be   : > { %1030 = vrsqrt.f32 %v542_v19 }
 0x2c8   : > { %v1031_v20 = vpop.eup %1030 }
 0x2c9   : > { %v544_v22 = vmul.f32 %v1031_v20, %v536_v12 }
 0x2cb   : > { %v551_v24 = vmul.f32 %v878_v21, %v544_v22 }
 0x2cd   : > { %v558_v25 = vadd.f32 %v879_v23, %v551_v24 }
 0x2cf   : > { %v559_v26 = vmax.f32 %v558_v25, 0.0 }
 0x2d1   : > { %v560_v27 = vpack.c.bf16 %v559_v26, %v559_v26 }
 0x2d3   : > { %913 = vmatmul.mubr.msk.bf16.vlgmr.msra.gmra.mrb[0].mxu1 %vm530_vm2, %v560_v27 }
 0x3a6   : > { %v621_v29 = vpop.f32.mrb[0].mxu1 }
 0x3a7   : > { %v622_v30 = vadd.f32 %v880_v28, %v621_v29  ;;  %v914_v31 = vpop.f32.mrb[1].mxu1 }
 0x3a8   : > { %v624_v32 = vpop.f32.mrb[2].mxu1 }
 0x3a9   : > { %v915_v33 = vpop.f32.mrb[3].mxu1  ;;  %v629_v34 = vsel %vm530_vm2, %v622_v30, 0.0 }
 0x3aa   : > { %630 = vadd.xlane.f32.xlu1 %v629_v34 }
 0x437   : > { %v631_v35 = vpop.xlane.xlu1 %630 }
 0x438   : > { %v632_v36 = vmul.f32 0.03125, %v631_v35 }
 0x43a   : > { %v633_v37 = vsub.f32 %v622_v30, %v632_v36 }
 0x43c   : > { %v634_v38 = vmul.f32 %v633_v37, %v633_v37 }
 0x43e   : > { %v635_v39 = vsel %vm530_vm2, %v634_v38, 0.0 }
 0x43f   : > { %636 = vadd.xlane.f32.xlu1 %v635_v39 }
 0x4cc   : > { %v637_v42 = vpop.xlane.xlu1 %636 }
 0x4cd   : > { %v638_v43 = vmul.f32 0.03125, %v637_v42 }
 0x4cf   : > { %v639_v44 = vadd.f32 1e-05, %v638_v43 }
 0x4d1   : > { %1032 = vrsqrt.f32 %v639_v44 }
 0x4db   : > { %v1033_v45 = vpop.eup %1032 }
 0x4dc   : > { %v641_v47 = vmul.f32 %v1033_v45, %v633_v37 }
 0x4de   : > { %v648_v49 = vmul.f32 %v884_v46, %v641_v47 }
 0x4e0   : > { %v655_v50 = vadd.f32 %v885_v48, %v648_v49 }
 0x4e2   : > { %v656_v51 = vmax.f32 %v655_v50, 0.0 }
 0x4e4   : > { %v657_v52 = vpack.c.bf16 %v656_v51, %v656_v51 }
 0x4e6   : > { %921 = vmatmul.mubr.msk.bf16.vlgmr.msra.gmra.mrb[4].mxu0 %vm530_vm2, %v657_v52 }
 0x5b9   : > { %v718_v54 = vpop.f32.mrb[4].mxu0 }
 0x5ba   : > { %v719_v55 = vadd.f32 %v886_v53, %v718_v54  ;;  %v922_v56 = vpop.f32.mrb[5].mxu0 }
 0x5bb   : > { %v721_v57 = vpop.f32.mrb[6].mxu0 }
 0x5bc   : > { %724 = vst [vmem:[%s466_s25] sm:$0xff] %v719_v55  ;;  %v923_v58 = vpop.f32.mrb[7].mxu0 }
 0x5bd   : > { %1217 = shalt.err (!%p1214_p0)
}
 0x5be   : > { %s1218_s9 = scalar_lea.hbm %s1637_s24, 128  ;;  %s1222_s28 = scalar_lea.hbm %s1718_s14, 256 }
 0x5bf   : > { %p1219_p6 = scmp.ne.s32.totalorder %s1637_s24, %s1218_s9  ;;  %p1223_p8 = scmp.lt.u32.totalorder %s1637_s24, %s1718_s14 }
 0x5c0   : > { %p1224_p5 = scmp.lt.u32.totalorder %s1222_s28, %s1218_s9  ;;  %p1226_p7 = scmp.lt.u32.totalorder %s1218_s9, %s1637_s24 }
 0x5c1   : > { %p1220_p10 = pnand %p1219_p6, %p1719_p4 }
 0x5c2   : > { %p1225_p9 = por %p1224_p5, %p1223_p8 }
 0x5c3   : > { %p1221_p11 = pneg %p1220_p10 }
 0x5c4   : > { %p1227_p12 = por %p1226_p7, %p1225_p9 }
 0x5c6   : > { %p1228_p13 = pnand %p1227_p12, %p1221_p11 }
 0x5c8   : > { %1231 = shalt.err (!%p1228_p13)
}
 0x5c9   : > { %946 = dma.vmem_to_hbm [thread:$0]  (%p1719_p4), %s1639_s21, 128, %s1637_s24, %s726_s11  }
 0x5ca PF: > { %s751_s23 = sand.u32 1, %s1270_s17   ;;  %p1720_p1 = scmp.ne.s32.totalorder %s1707_s15, 0 }
 0x5cb   : > { %p1721_p3 = scmp.ge.s32.totalorder %s1282_s20, 2  ;;  %s752_s22 = scalar_lea.sflag [#allocation4], %s751_s23 }
 0x5cd   : > { %p969_p2 = pnand %p1721_p3, %p1720_p1 }
 0x5cf   : > { %1265 = dma.done.wait (!%p969_p2), %s752_s22, 128  }
 0x5d0   : > { %1267 = vsyncadd (!%p969_p2), %s752_s22, 4294967168  ;;  %p27_p0 = scmp.ge.s32.totalorder %s1515_s27, 4   ;;  %s1722_s17 = smov %s1274_s18 }
 0x5d1   : > { %s1723_s18 = smov %s1278_s19  ;;  %s1724_s19 = smov %s1527_s30 }
 0x5d2   : > { %s1725_s20 = smov %s1515_s27  ;;  %29 = sbr.rel (!%p27_p0) target bundleno = 12 (0xc), region = 129 }
 0x5d9   :  { %757 = vsyncpa [#allocation3], 1 }
 0x5da   :  { %759 = vsyncpa [#allocation3 + $0x1], 1 }
 0x5db   :  { %760 = vsyncpa [#allocation6], 1 }
 0x5dc   :  { %761 = vsyncpa [#allocation9], 1 }
 0x5dd   :  { %762 = vsyncpa [#allocation12], 1 }
 0x5de   :  { %763 = vsyncpa [#allocation4], 1 }
 0x5df   :  { %765 = vsyncpa [#allocation4 + $0x1], 1 }

</bundles_post_ra>
